<compile_context>
chip_gen: v7x
topology: tpu7x:2x2x1
jax: 0.10.0
libtpu: 0.0.40
codegen_flags: <defaults>
</compile_context>

<pallas_src>
import math

import jax
import jax.numpy as jnp
from jax import lax
from jax.experimental import pallas as pl
from jax.experimental.pallas import tpu as pltpu

EPS = 1e-5            # PyTorch BatchNorm1d default eps
LANE = 128            # lane width: pad feature dims to multiples of this
NEG_INF = -1e30       # padding value for label biases (vanishes in softmax)
VREG_POOL_ROWS = 16   # up to this many rows the pooled block stays in vregs


# ---------------------------------------------------------------------------
# Fused kernel, per batch tile:
#   1) gather embedding rows (VMEM-resident table, dynamic sublane slices) and
#      max-reduce over the sequence with a pairwise maximum tree,
#   2) BN-folded MLP: Linear->ReLU, Linear->ReLU, Linear (f32 accumulation),
#   3) softmax over the (lane-padded) labels.
# ---------------------------------------------------------------------------
def fused_kernel(tok_ref, emb_ref, w1_ref, b1_ref, w2_ref, b2_ref,
                 w3_ref, b3_ref, out_ref, pooled_ref):
    tb = pooled_ref.shape[0]
    s_len = tok_ref.shape[1]

    def row_max(r):
        # Gather the S embedding rows of batch-row `r`, then tree-reduce with
        # jnp.maximum: log2(S) dependency depth instead of an S-deep serial
        # load->max chain (loads issue back-to-back, maxima stay on the VPU).
        vals = [emb_ref[pl.ds(tok_ref[r, s], 1), :] for s in range(s_len)]
        while len(vals) > 1:
            nxt = [jnp.maximum(vals[i], vals[i + 1])
                   for i in range(0, len(vals) - 1, 2)]
            if len(vals) % 2:
                nxt.append(vals[-1])
            vals = nxt
        return vals[0]                                      # (1, E_pad)

    if tb <= VREG_POOL_ROWS:
        # Small tile: pooled block lives in vregs; no scratch store/reload
        # between the gather phase and the first matmul.
        x = jnp.concatenate([row_max(r) for r in range(tb)], axis=0)
    else:
        # Large tile: bounded live ranges via fori_loop + VMEM scratch.
        def body(r, carry):
            pooled_ref[pl.ds(r, 1), :] = row_max(r)
            return carry
        lax.fori_loop(0, tb, body, 0)
        x = pooled_ref[...]

    # ---- BN-folded MLP (weights may be bf16; accumulation is f32) ----
    def affine(a, w_ref, b_ref):
        return (jnp.dot(a.astype(w_ref.dtype), w_ref[...],
                        preferred_element_type=jnp.float32) + b_ref[...])

    h = jnp.maximum(affine(x, w1_ref, b1_ref), 0.0)
    h = jnp.maximum(affine(h, w2_ref, b2_ref), 0.0)
    logits = affine(h, w3_ref, b3_ref)        # padded label lanes hold ~-1e30

    # ---- softmax over labels (F.softmax on 2-D -> dim=1) ----
    mx = jnp.max(logits, axis=-1, keepdims=True)
    ex = jnp.exp(logits - mx)                 # padded lanes underflow to 0
    den = jnp.sum(ex, axis=-1, keepdims=True)
    inv = pl.reciprocal(den, approx=True)     # EUP slot (otherwise idle)
    inv = inv * (2.0 - den * inv)             # one Newton step -> f32-accurate
    out_ref[...] = (ex * inv).astype(out_ref.dtype)


def _pad_axis(x, axis, mult, value=0.0):
    size = x.shape[axis]
    target = pl.cdiv(size, mult) * mult
    if target == size:
        return x
    pads = [(0, 0)] * x.ndim
    pads[axis] = (0, target - size)
    return jnp.pad(x, pads, constant_values=value)


def max_embedding_forward(tokens, fused, n_labels, *, param_dtype=jnp.float32):
    B, S = tokens.shape
    V, E = fused["emb"].shape

    # ---- host-side layout plumbing: lane-dense feature dims -----------------
    # Pad E / H1 / H2 / n_labels to multiples of 128 so gather loads, matmul
    # operands and the output store use full vregs (n_labels=8 would otherwise
    # produce masked 8-of-128-lane stores).  Padded label biases get -1e30 so
    # the padded lanes contribute nothing to the softmax.
    emb = _pad_axis(fused["emb"].astype(jnp.float32), 1, LANE)   # table stays f32
    w1 = _pad_axis(_pad_axis(fused["w1f"], 0, LANE), 1, LANE).astype(param_dtype)
    b1 = _pad_axis(fused["b1f"], 1, LANE).astype(jnp.float32)
    w2 = _pad_axis(_pad_axis(fused["w2f"], 0, LANE), 1, LANE).astype(param_dtype)
    b2 = _pad_axis(fused["b2f"], 1, LANE).astype(jnp.float32)
    w3 = _pad_axis(_pad_axis(fused["w3"], 0, LANE), 1, LANE).astype(param_dtype)
    b3 = _pad_axis(fused["b3"], 1, LANE, value=NEG_INF).astype(jnp.float32)

    E_pad, H1_pad = w1.shape
    H2_pad = w2.shape[1]
    NL_pad = w3.shape[1]

    # ---- batch tiling --------------------------------------------------------
    # Clip ids (no OOB check on TPU VMEM), pad the batch to a sublane multiple,
    # then pick TB = min(128, padded_B): a full MXU row tile when possible.
    tokens = jnp.clip(tokens.astype(jnp.int32), 0, V - 1)
    b_pad = pl.cdiv(B, 8) * 8
    TB = min(128, b_pad)
    b_pad = pl.cdiv(b_pad, TB) * TB
    if b_pad != B:
        tokens = jnp.pad(tokens, ((0, b_pad - B), (0, 0)))
    n_tiles = b_pad // TB

    def const_spec(shape):
        # Grid-invariant operand: constant index_map, single-buffered.
        return pl.BlockSpec(shape, lambda b: (0, 0),
                            pipeline_mode=pl.Buffered(buffer_count=1))

    in_specs = [
        # per-tile token ids -> SMEM (cheap scalar-indexed reads in the gather)
        pl.BlockSpec((TB, S), lambda b: (b, 0),
                     memory_space=pltpu.MemorySpace.SMEM),
        const_spec((V, E_pad)),          # embedding table (VMEM resident)
        const_spec((E_pad, H1_pad)),     # BN-folded w1
        const_spec((1, H1_pad)),         # BN-folded b1
        const_spec((H1_pad, H2_pad)),    # BN-folded w2
        const_spec((1, H2_pad)),         # BN-folded b2
        const_spec((H2_pad, NL_pad)),    # w3
        const_spec((1, NL_pad)),         # b3 (padded lanes = -1e30)
    ]

    out = pl.pallas_call(
        fused_kernel,
        out_shape=jax.ShapeDtypeStruct((b_pad, NL_pad), jnp.float32),
        grid=(n_tiles,),
        in_specs=in_specs,
        out_specs=pl.BlockSpec((TB, NL_pad), lambda b: (b, 0)),
        scratch_shapes=[pltpu.VMEM((TB, E_pad), emb.dtype)],   # pooled feats
        compiler_params=pltpu.CompilerParams(
            dimension_semantics=("parallel",),    # batch tiles -> v7x megacore
            vmem_limit_bytes=32 * 1024 * 1024,
        ),
    )(tokens, emb, w1, b1, w2, b2, w3, b3)
    return out[:B, :n_labels]


# ---------------------------------------------------------------------------
# Parameter init, mirroring init():
#   Linear: kaiming_normal (std = sqrt(2 / fan_in)), bias = 0
#   BatchNorm1d: gamma = 1, beta = 0, running_mean = 0, running_var = 1
#   Embedding: synthetic w2v.emb_mat (random normal)
# Linear weights stored transposed as [in, out]; kernel computes x @ W + b.
# ---------------------------------------------------------------------------
def init_raw_params(key, V, E, hidden, n_labels):
    H1, H2 = hidden
    k_emb, k1, k2, k3 = jax.random.split(key, 4)

    def kaiming(k, fan_in, fan_out):
        return (jax.random.normal(k, (fan_in, fan_out), jnp.float32)
                * math.sqrt(2.0 / fan_in))

    def bn_stack(dim):  # rows: gamma, beta, running_mean, running_var
        return jnp.stack([jnp.ones((dim,)), jnp.zeros((dim,)),
                          jnp.zeros((dim,)), jnp.ones((dim,))]).astype(jnp.float32)

    return dict(
        emb=jax.random.normal(k_emb, (V, E), jnp.float32),
        bn_in=bn_stack(E),
        w1=kaiming(k1, E, H1), b1=jnp.zeros((1, H1), jnp.float32), bn1=bn_stack(H1),
        w2=kaiming(k2, H1, H2), b2=jnp.zeros((1, H2), jnp.float32), bn2=bn_stack(H2),
        w3=kaiming(k3, H2, n_labels), b3=jnp.zeros((1, n_labels), jnp.float32),
    )


def fold_bn_inference(raw):
    """Fold inference-mode BatchNorm into the Linear weights/biases (host-side)."""
    def scale_shift(bn):
        g, b, m, v = bn
        s = g * jax.lax.rsqrt(v + EPS)
        return s, b - m * s

    s_in, t_in = scale_shift(raw["bn_in"])
    s1, t1 = scale_shift(raw["bn1"])
    s2, t2 = scale_shift(raw["bn2"])

    w1f = raw["w1"] * s_in[:, None] * s1[None, :]
    b1f = (t_in @ raw["w1"]) * s1 + raw["b1"] * s1 + t1
    w2f = raw["w2"] * s2[None, :]
    b2f = raw["b2"] * s2 + t2
    return dict(emb=raw["emb"], w1f=w1f, b1f=b1f, w2f=w2f, b2f=b2f,
                w3=raw["w3"], b3=raw["b3"])


# Pure-JAX reference of the same forward pass (unfused BN, exact softmax).
def reference(tokens, p):
    x = p["emb"][tokens]          # [B, S, E]
    x = jnp.max(x, axis=1)        # [B, E]

    def bn(x, s):
        return (x - s[2]) * (s[0] / jnp.sqrt(s[3] + EPS)) + s[1]

    x = bn(x, p["bn_in"])
    x = jnp.maximum(bn(x @ p["w1"] + p["b1"], p["bn1"]), 0.0)
    x = jnp.maximum(bn(x @ p["w2"] + p["b2"], p["bn2"]), 0.0)
    x = x @ p["w3"] + p["b3"]
    return jax.nn.softmax(x, axis=-1)


if __name__ == "__main__":
    B, S = 2, 8            # batch, seqlen
    V, E = 64, 32          # vocab size, n_embfactors
    hidden = (64, 32)      # scaled-down hidden_szs (reference default [2000, 1000])
    n_labels = 8

    key = jax.random.PRNGKey(0)
    k_param, k_tok = jax.random.split(key)
    raw = init_raw_params(k_param, V, E, hidden, n_labels)
    fused = fold_bn_inference(raw)
    tokens = jax.random.randint(k_tok, (B, S), 0, V, dtype=jnp.int32)

    ref = reference(tokens, raw)

    # f32 weights: tight check against the unfused pure-JAX reference.
    out = jax.block_until_ready(max_embedding_forward(tokens, fused, n_labels))
    assert out.shape == (B, n_labels)
    assert jnp.allclose(out, ref, atol=1e-4, rtol=1e-4), (out, ref)
    assert jnp.allclose(jnp.sum(out, axis=-1), 1.0, atol=1e-3)

    # bf16 MLP weights (the v6e/v7x production setting: bf16 storage, f32
    # accumulation): loose-tolerance check.
    out_bf16 = jax.block_until_ready(
        max_embedding_forward(tokens, fused, n_labels, param_dtype=jnp.bfloat16))
    assert out_bf16.shape == (B, n_labels)
    assert jnp.allclose(out_bf16, ref, atol=5e-2), (out_bf16, ref)
    assert jnp.allclose(jnp.sum(out_bf16, axis=-1), 1.0, atol=1e-2)

    print("KERNEL_OK")
</pallas_src>

<mosaic_0001>
module attributes {stable_mosaic.version = 11 : i64} {
  func.func @fused_kernel(%arg0: i32, %arg1: memref<8x8xi32, #tpu.memory_space<smem>>, %arg2: memref<64x128xf32, #tpu.memory_space<vmem>>, %arg3: memref<128x128xf32, #tpu.memory_space<vmem>>, %arg4: memref<1x128xf32, #tpu.memory_space<vmem>>, %arg5: memref<128x128xf32, #tpu.memory_space<vmem>>, %arg6: memref<1x128xf32, #tpu.memory_space<vmem>>, %arg7: memref<128x128xf32, #tpu.memory_space<vmem>>, %arg8: memref<1x128xf32, #tpu.memory_space<vmem>>, %arg9: memref<8x128xf32, #tpu.memory_space<vmem>>, %arg10: memref<8x128xf32, #tpu.memory_space<vmem>>) attributes {dimension_semantics = [#tpu.dimension_semantics<parallel>], iteration_bounds = array<i64: 1>, scalar_prefetch = 0 : i64, scratch_operands = 1 : i64, tpu.core_type = #tpu.core_type<tc>, window_params = [{transform_indices = @transform_0, window_bounds = array<i64: 8, 8>}, {pipeline_mode = #tpu.pipeline_mode<synchronous>, transform_indices = @transform_1, window_bounds = array<i64: 64, 128>}, {pipeline_mode = #tpu.pipeline_mode<synchronous>, transform_indices = @transform_2, window_bounds = array<i64: 128, 128>}, {pipeline_mode = #tpu.pipeline_mode<synchronous>, transform_indices = @transform_3, window_bounds = array<i64: 1, 128>}, {pipeline_mode = #tpu.pipeline_mode<synchronous>, transform_indices = @transform_4, window_bounds = array<i64: 128, 128>}, {pipeline_mode = #tpu.pipeline_mode<synchronous>, transform_indices = @transform_5, window_bounds = array<i64: 1, 128>}, {pipeline_mode = #tpu.pipeline_mode<synchronous>, transform_indices = @transform_6, window_bounds = array<i64: 128, 128>}, {pipeline_mode = #tpu.pipeline_mode<synchronous>, transform_indices = @transform_7, window_bounds = array<i64: 1, 128>}, {transform_indices = @transform_8, window_bounds = array<i64: 8, 128>}]} {
    %c0 = arith.constant 0 : index
    %c0_0 = arith.constant 0 : index
    %0 = memref.load %arg1[%c0, %c0_0] : memref<8x8xi32, #tpu.memory_space<smem>>
    %1 = arith.index_cast %0 : i32 to index
    %c0_1 = arith.constant 0 : index
    %2 = vector.load %arg2[%1, %c0_1] : memref<64x128xf32, #tpu.memory_space<vmem>>, vector<1x128xf32>
    %c0_2 = arith.constant 0 : index
    %c1 = arith.constant 1 : index
    %3 = memref.load %arg1[%c0_2, %c1] : memref<8x8xi32, #tpu.memory_space<smem>>
    %4 = arith.index_cast %3 : i32 to index
    %c0_3 = arith.constant 0 : index
    %5 = vector.load %arg2[%4, %c0_3] : memref<64x128xf32, #tpu.memory_space<vmem>>, vector<1x128xf32>
    %c0_4 = arith.constant 0 : index
    %c2 = arith.constant 2 : index
    %6 = memref.load %arg1[%c0_4, %c2] : memref<8x8xi32, #tpu.memory_space<smem>>
    %7 = arith.index_cast %6 : i32 to index
    %c0_5 = arith.constant 0 : index
    %8 = vector.load %arg2[%7, %c0_5] : memref<64x128xf32, #tpu.memory_space<vmem>>, vector<1x128xf32>
    %c0_6 = arith.constant 0 : index
    %c3 = arith.constant 3 : index
    %9 = memref.load %arg1[%c0_6, %c3] : memref<8x8xi32, #tpu.memory_space<smem>>
    %10 = arith.index_cast %9 : i32 to index
    %c0_7 = arith.constant 0 : index
    %11 = vector.load %arg2[%10, %c0_7] : memref<64x128xf32, #tpu.memory_space<vmem>>, vector<1x128xf32>
    %c0_8 = arith.constant 0 : index
    %c4 = arith.constant 4 : index
    %12 = memref.load %arg1[%c0_8, %c4] : memref<8x8xi32, #tpu.memory_space<smem>>
    %13 = arith.index_cast %12 : i32 to index
    %c0_9 = arith.constant 0 : index
    %14 = vector.load %arg2[%13, %c0_9] : memref<64x128xf32, #tpu.memory_space<vmem>>, vector<1x128xf32>
    %c0_10 = arith.constant 0 : index
    %c5 = arith.constant 5 : index
    %15 = memref.load %arg1[%c0_10, %c5] : memref<8x8xi32, #tpu.memory_space<smem>>
    %16 = arith.index_cast %15 : i32 to index
    %c0_11 = arith.constant 0 : index
    %17 = vector.load %arg2[%16, %c0_11] : memref<64x128xf32, #tpu.memory_space<vmem>>, vector<1x128xf32>
    %c0_12 = arith.constant 0 : index
    %c6 = arith.constant 6 : index
    %18 = memref.load %arg1[%c0_12, %c6] : memref<8x8xi32, #tpu.memory_space<smem>>
    %19 = arith.index_cast %18 : i32 to index
    %c0_13 = arith.constant 0 : index
    %20 = vector.load %arg2[%19, %c0_13] : memref<64x128xf32, #tpu.memory_space<vmem>>, vector<1x128xf32>
    %c0_14 = arith.constant 0 : index
    %c7 = arith.constant 7 : index
    %21 = memref.load %arg1[%c0_14, %c7] : memref<8x8xi32, #tpu.memory_space<smem>>
    %22 = arith.index_cast %21 : i32 to index
    %c0_15 = arith.constant 0 : index
    %23 = vector.load %arg2[%22, %c0_15] : memref<64x128xf32, #tpu.memory_space<vmem>>, vector<1x128xf32>
    %24 = arith.maximumf %2, %5 : vector<1x128xf32>
    %25 = arith.maximumf %8, %11 : vector<1x128xf32>
    %26 = arith.maximumf %14, %17 : vector<1x128xf32>
    %27 = arith.maximumf %20, %23 : vector<1x128xf32>
    %28 = arith.maximumf %24, %25 : vector<1x128xf32>
    %29 = arith.maximumf %26, %27 : vector<1x128xf32>
    %30 = arith.maximumf %28, %29 : vector<1x128xf32>
    %c1_16 = arith.constant 1 : index
    %c0_17 = arith.constant 0 : index
    %31 = memref.load %arg1[%c1_16, %c0_17] : memref<8x8xi32, #tpu.memory_space<smem>>
    %32 = arith.index_cast %31 : i32 to index
    %c0_18 = arith.constant 0 : index
    %33 = vector.load %arg2[%32, %c0_18] : memref<64x128xf32, #tpu.memory_space<vmem>>, vector<1x128xf32>
    %c1_19 = arith.constant 1 : index
    %c1_20 = arith.constant 1 : index
    %34 = memref.load %arg1[%c1_19, %c1_20] : memref<8x8xi32, #tpu.memory_space<smem>>
    %35 = arith.index_cast %34 : i32 to index
    %c0_21 = arith.constant 0 : index
    %36 = vector.load %arg2[%35, %c0_21] : memref<64x128xf32, #tpu.memory_space<vmem>>, vector<1x128xf32>
    %c1_22 = arith.constant 1 : index
    %c2_23 = arith.constant 2 : index
    %37 = memref.load %arg1[%c1_22, %c2_23] : memref<8x8xi32, #tpu.memory_space<smem>>
    %38 = arith.index_cast %37 : i32 to index
    %c0_24 = arith.constant 0 : index
    %39 = vector.load %arg2[%38, %c0_24] : memref<64x128xf32, #tpu.memory_space<vmem>>, vector<1x128xf32>
    %c1_25 = arith.constant 1 : index
    %c3_26 = arith.constant 3 : index
    %40 = memref.load %arg1[%c1_25, %c3_26] : memref<8x8xi32, #tpu.memory_space<smem>>
    %41 = arith.index_cast %40 : i32 to index
    %c0_27 = arith.constant 0 : index
    %42 = vector.load %arg2[%41, %c0_27] : memref<64x128xf32, #tpu.memory_space<vmem>>, vector<1x128xf32>
    %c1_28 = arith.constant 1 : index
    %c4_29 = arith.constant 4 : index
    %43 = memref.load %arg1[%c1_28, %c4_29] : memref<8x8xi32, #tpu.memory_space<smem>>
    %44 = arith.index_cast %43 : i32 to index
    %c0_30 = arith.constant 0 : index
    %45 = vector.load %arg2[%44, %c0_30] : memref<64x128xf32, #tpu.memory_space<vmem>>, vector<1x128xf32>
    %c1_31 = arith.constant 1 : index
    %c5_32 = arith.constant 5 : index
    %46 = memref.load %arg1[%c1_31, %c5_32] : memref<8x8xi32, #tpu.memory_space<smem>>
    %47 = arith.index_cast %46 : i32 to index
    %c0_33 = arith.constant 0 : index
    %48 = vector.load %arg2[%47, %c0_33] : memref<64x128xf32, #tpu.memory_space<vmem>>, vector<1x128xf32>
    %c1_34 = arith.constant 1 : index
    %c6_35 = arith.constant 6 : index
    %49 = memref.load %arg1[%c1_34, %c6_35] : memref<8x8xi32, #tpu.memory_space<smem>>
    %50 = arith.index_cast %49 : i32 to index
    %c0_36 = arith.constant 0 : index
    %51 = vector.load %arg2[%50, %c0_36] : memref<64x128xf32, #tpu.memory_space<vmem>>, vector<1x128xf32>
    %c1_37 = arith.constant 1 : index
    %c7_38 = arith.constant 7 : index
    %52 = memref.load %arg1[%c1_37, %c7_38] : memref<8x8xi32, #tpu.memory_space<smem>>
    %53 = arith.index_cast %52 : i32 to index
    %c0_39 = arith.constant 0 : index
    %54 = vector.load %arg2[%53, %c0_39] : memref<64x128xf32, #tpu.memory_space<vmem>>, vector<1x128xf32>
    %55 = arith.maximumf %33, %36 : vector<1x128xf32>
    %56 = arith.maximumf %39, %42 : vector<1x128xf32>
    %57 = arith.maximumf %45, %48 : vector<1x128xf32>
    %58 = arith.maximumf %51, %54 : vector<1x128xf32>
    %59 = arith.maximumf %55, %56 : vector<1x128xf32>
    %60 = arith.maximumf %57, %58 : vector<1x128xf32>
    %61 = arith.maximumf %59, %60 : vector<1x128xf32>
    %c2_40 = arith.constant 2 : index
    %c0_41 = arith.constant 0 : index
    %62 = memref.load %arg1[%c2_40, %c0_41] : memref<8x8xi32, #tpu.memory_space<smem>>
    %63 = arith.index_cast %62 : i32 to index
    %c0_42 = arith.constant 0 : index
    %64 = vector.load %arg2[%63, %c0_42] : memref<64x128xf32, #tpu.memory_space<vmem>>, vector<1x128xf32>
    %c2_43 = arith.constant 2 : index
    %c1_44 = arith.constant 1 : index
    %65 = memref.load %arg1[%c2_43, %c1_44] : memref<8x8xi32, #tpu.memory_space<smem>>
    %66 = arith.index_cast %65 : i32 to index
    %c0_45 = arith.constant 0 : index
    %67 = vector.load %arg2[%66, %c0_45] : memref<64x128xf32, #tpu.memory_space<vmem>>, vector<1x128xf32>
    %c2_46 = arith.constant 2 : index
    %c2_47 = arith.constant 2 : index
    %68 = memref.load %arg1[%c2_46, %c2_47] : memref<8x8xi32, #tpu.memory_space<smem>>
    %69 = arith.index_cast %68 : i32 to index
    %c0_48 = arith.constant 0 : index
    %70 = vector.load %arg2[%69, %c0_48] : memref<64x128xf32, #tpu.memory_space<vmem>>, vector<1x128xf32>
    %c2_49 = arith.constant 2 : index
    %c3_50 = arith.constant 3 : index
    %71 = memref.load %arg1[%c2_49, %c3_50] : memref<8x8xi32, #tpu.memory_space<smem>>
    %72 = arith.index_cast %71 : i32 to index
    %c0_51 = arith.constant 0 : index
    %73 = vector.load %arg2[%72, %c0_51] : memref<64x128xf32, #tpu.memory_space<vmem>>, vector<1x128xf32>
    %c2_52 = arith.constant 2 : index
    %c4_53 = arith.constant 4 : index
    %74 = memref.load %arg1[%c2_52, %c4_53] : memref<8x8xi32, #tpu.memory_space<smem>>
    %75 = arith.index_cast %74 : i32 to index
    %c0_54 = arith.constant 0 : index
    %76 = vector.load %arg2[%75, %c0_54] : memref<64x128xf32, #tpu.memory_space<vmem>>, vector<1x128xf32>
    %c2_55 = arith.constant 2 : index
    %c5_56 = arith.constant 5 : index
    %77 = memref.load %arg1[%c2_55, %c5_56] : memref<8x8xi32, #tpu.memory_space<smem>>
    %78 = arith.index_cast %77 : i32 to index
    %c0_57 = arith.constant 0 : index
    %79 = vector.load %arg2[%78, %c0_57] : memref<64x128xf32, #tpu.memory_space<vmem>>, vector<1x128xf32>
    %c2_58 = arith.constant 2 : index
    %c6_59 = arith.constant 6 : index
    %80 = memref.load %arg1[%c2_58, %c6_59] : memref<8x8xi32, #tpu.memory_space<smem>>
    %81 = arith.index_cast %80 : i32 to index
    %c0_60 = arith.constant 0 : index
    %82 = vector.load %arg2[%81, %c0_60] : memref<64x128xf32, #tpu.memory_space<vmem>>, vector<1x128xf32>
    %c2_61 = arith.constant 2 : index
    %c7_62 = arith.constant 7 : index
    %83 = memref.load %arg1[%c2_61, %c7_62] : memref<8x8xi32, #tpu.memory_space<smem>>
    %84 = arith.index_cast %83 : i32 to index
    %c0_63 = arith.constant 0 : index
    %85 = vector.load %arg2[%84, %c0_63] : memref<64x128xf32, #tpu.memory_space<vmem>>, vector<1x128xf32>
    %86 = arith.maximumf %64, %67 : vector<1x128xf32>
    %87 = arith.maximumf %70, %73 : vector<1x128xf32>
    %88 = arith.maximumf %76, %79 : vector<1x128xf32>
    %89 = arith.maximumf %82, %85 : vector<1x128xf32>
    %90 = arith.maximumf %86, %87 : vector<1x128xf32>
    %91 = arith.maximumf %88, %89 : vector<1x128xf32>
    %92 = arith.maximumf %90, %91 : vector<1x128xf32>
    %c3_64 = arith.constant 3 : index
    %c0_65 = arith.constant 0 : index
    %93 = memref.load %arg1[%c3_64, %c0_65] : memref<8x8xi32, #tpu.memory_space<smem>>
    %94 = arith.index_cast %93 : i32 to index
    %c0_66 = arith.constant 0 : index
    %95 = vector.load %arg2[%94, %c0_66] : memref<64x128xf32, #tpu.memory_space<vmem>>, vector<1x128xf32>
    %c3_67 = arith.constant 3 : index
    %c1_68 = arith.constant 1 : index
    %96 = memref.load %arg1[%c3_67, %c1_68] : memref<8x8xi32, #tpu.memory_space<smem>>
    %97 = arith.index_cast %96 : i32 to index
    %c0_69 = arith.constant 0 : index
    %98 = vector.load %arg2[%97, %c0_69] : memref<64x128xf32, #tpu.memory_space<vmem>>, vector<1x128xf32>
    %c3_70 = arith.constant 3 : index
    %c2_71 = arith.constant 2 : index
    %99 = memref.load %arg1[%c3_70, %c2_71] : memref<8x8xi32, #tpu.memory_space<smem>>
    %100 = arith.index_cast %99 : i32 to index
    %c0_72 = arith.constant 0 : index
    %101 = vector.load %arg2[%100, %c0_72] : memref<64x128xf32, #tpu.memory_space<vmem>>, vector<1x128xf32>
    %c3_73 = arith.constant 3 : index
    %c3_74 = arith.constant 3 : index
    %102 = memref.load %arg1[%c3_73, %c3_74] : memref<8x8xi32, #tpu.memory_space<smem>>
    %103 = arith.index_cast %102 : i32 to index
    %c0_75 = arith.constant 0 : index
    %104 = vector.load %arg2[%103, %c0_75] : memref<64x128xf32, #tpu.memory_space<vmem>>, vector<1x128xf32>
    %c3_76 = arith.constant 3 : index
    %c4_77 = arith.constant 4 : index
    %105 = memref.load %arg1[%c3_76, %c4_77] : memref<8x8xi32, #tpu.memory_space<smem>>
    %106 = arith.index_cast %105 : i32 to index
    %c0_78 = arith.constant 0 : index
    %107 = vector.load %arg2[%106, %c0_78] : memref<64x128xf32, #tpu.memory_space<vmem>>, vector<1x128xf32>
    %c3_79 = arith.constant 3 : index
    %c5_80 = arith.constant 5 : index
    %108 = memref.load %arg1[%c3_79, %c5_80] : memref<8x8xi32, #tpu.memory_space<smem>>
    %109 = arith.index_cast %108 : i32 to index
    %c0_81 = arith.constant 0 : index
    %110 = vector.load %arg2[%109, %c0_81] : memref<64x128xf32, #tpu.memory_space<vmem>>, vector<1x128xf32>
    %c3_82 = arith.constant 3 : index
    %c6_83 = arith.constant 6 : index
    %111 = memref.load %arg1[%c3_82, %c6_83] : memref<8x8xi32, #tpu.memory_space<smem>>
    %112 = arith.index_cast %111 : i32 to index
    %c0_84 = arith.constant 0 : index
    %113 = vector.load %arg2[%112, %c0_84] : memref<64x128xf32, #tpu.memory_space<vmem>>, vector<1x128xf32>
    %c3_85 = arith.constant 3 : index
    %c7_86 = arith.constant 7 : index
    %114 = memref.load %arg1[%c3_85, %c7_86] : memref<8x8xi32, #tpu.memory_space<smem>>
    %115 = arith.index_cast %114 : i32 to index
    %c0_87 = arith.constant 0 : index
    %116 = vector.load %arg2[%115, %c0_87] : memref<64x128xf32, #tpu.memory_space<vmem>>, vector<1x128xf32>
    %117 = arith.maximumf %95, %98 : vector<1x128xf32>
    %118 = arith.maximumf %101, %104 : vector<1x128xf32>
    %119 = arith.maximumf %107, %110 : vector<1x128xf32>
    %120 = arith.maximumf %113, %116 : vector<1x128xf32>
    %121 = arith.maximumf %117, %118 : vector<1x128xf32>
    %122 = arith.maximumf %119, %120 : vector<1x128xf32>
    %123 = arith.maximumf %121, %122 : vector<1x128xf32>
    %c4_88 = arith.constant 4 : index
    %c0_89 = arith.constant 0 : index
    %124 = memref.load %arg1[%c4_88, %c0_89] : memref<8x8xi32, #tpu.memory_space<smem>>
    %125 = arith.index_cast %124 : i32 to index
    %c0_90 = arith.constant 0 : index
    %126 = vector.load %arg2[%125, %c0_90] : memref<64x128xf32, #tpu.memory_space<vmem>>, vector<1x128xf32>
    %c4_91 = arith.constant 4 : index
    %c1_92 = arith.constant 1 : index
    %127 = memref.load %arg1[%c4_91, %c1_92] : memref<8x8xi32, #tpu.memory_space<smem>>
    %128 = arith.index_cast %127 : i32 to index
    %c0_93 = arith.constant 0 : index
    %129 = vector.load %arg2[%128, %c0_93] : memref<64x128xf32, #tpu.memory_space<vmem>>, vector<1x128xf32>
    %c4_94 = arith.constant 4 : index
    %c2_95 = arith.constant 2 : index
    %130 = memref.load %arg1[%c4_94, %c2_95] : memref<8x8xi32, #tpu.memory_space<smem>>
    %131 = arith.index_cast %130 : i32 to index
    %c0_96 = arith.constant 0 : index
    %132 = vector.load %arg2[%131, %c0_96] : memref<64x128xf32, #tpu.memory_space<vmem>>, vector<1x128xf32>
    %c4_97 = arith.constant 4 : index
    %c3_98 = arith.constant 3 : index
    %133 = memref.load %arg1[%c4_97, %c3_98] : memref<8x8xi32, #tpu.memory_space<smem>>
    %134 = arith.index_cast %133 : i32 to index
    %c0_99 = arith.constant 0 : index
    %135 = vector.load %arg2[%134, %c0_99] : memref<64x128xf32, #tpu.memory_space<vmem>>, vector<1x128xf32>
    %c4_100 = arith.constant 4 : index
    %c4_101 = arith.constant 4 : index
    %136 = memref.load %arg1[%c4_100, %c4_101] : memref<8x8xi32, #tpu.memory_space<smem>>
    %137 = arith.index_cast %136 : i32 to index
    %c0_102 = arith.constant 0 : index
    %138 = vector.load %arg2[%137, %c0_102] : memref<64x128xf32, #tpu.memory_space<vmem>>, vector<1x128xf32>
    %c4_103 = arith.constant 4 : index
    %c5_104 = arith.constant 5 : index
    %139 = memref.load %arg1[%c4_103, %c5_104] : memref<8x8xi32, #tpu.memory_space<smem>>
    %140 = arith.index_cast %139 : i32 to index
    %c0_105 = arith.constant 0 : index
    %141 = vector.load %arg2[%140, %c0_105] : memref<64x128xf32, #tpu.memory_space<vmem>>, vector<1x128xf32>
    %c4_106 = arith.constant 4 : index
    %c6_107 = arith.constant 6 : index
    %142 = memref.load %arg1[%c4_106, %c6_107] : memref<8x8xi32, #tpu.memory_space<smem>>
    %143 = arith.index_cast %142 : i32 to index
    %c0_108 = arith.constant 0 : index
    %144 = vector.load %arg2[%143, %c0_108] : memref<64x128xf32, #tpu.memory_space<vmem>>, vector<1x128xf32>
    %c4_109 = arith.constant 4 : index
    %c7_110 = arith.constant 7 : index
    %145 = memref.load %arg1[%c4_109, %c7_110] : memref<8x8xi32, #tpu.memory_space<smem>>
    %146 = arith.index_cast %145 : i32 to index
    %c0_111 = arith.constant 0 : index
    %147 = vector.load %arg2[%146, %c0_111] : memref<64x128xf32, #tpu.memory_space<vmem>>, vector<1x128xf32>
    %148 = arith.maximumf %126, %129 : vector<1x128xf32>
    %149 = arith.maximumf %132, %135 : vector<1x128xf32>
    %150 = arith.maximumf %138, %141 : vector<1x128xf32>
    %151 = arith.maximumf %144, %147 : vector<1x128xf32>
    %152 = arith.maximumf %148, %149 : vector<1x128xf32>
    %153 = arith.maximumf %150, %151 : vector<1x128xf32>
    %154 = arith.maximumf %152, %153 : vector<1x128xf32>
    %c5_112 = arith.constant 5 : index
    %c0_113 = arith.constant 0 : index
    %155 = memref.load %arg1[%c5_112, %c0_113] : memref<8x8xi32, #tpu.memory_space<smem>>
    %156 = arith.index_cast %155 : i32 to index
    %c0_114 = arith.constant 0 : index
    %157 = vector.load %arg2[%156, %c0_114] : memref<64x128xf32, #tpu.memory_space<vmem>>, vector<1x128xf32>
    %c5_115 = arith.constant 5 : index
    %c1_116 = arith.constant 1 : index
    %158 = memref.load %arg1[%c5_115, %c1_116] : memref<8x8xi32, #tpu.memory_space<smem>>
    %159 = arith.index_cast %158 : i32 to index
    %c0_117 = arith.constant 0 : index
    %160 = vector.load %arg2[%159, %c0_117] : memref<64x128xf32, #tpu.memory_space<vmem>>, vector<1x128xf32>
    %c5_118 = arith.constant 5 : index
    %c2_119 = arith.constant 2 : index
    %161 = memref.load %arg1[%c5_118, %c2_119] : memref<8x8xi32, #tpu.memory_space<smem>>
    %162 = arith.index_cast %161 : i32 to index
    %c0_120 = arith.constant 0 : index
    %163 = vector.load %arg2[%162, %c0_120] : memref<64x128xf32, #tpu.memory_space<vmem>>, vector<1x128xf32>
    %c5_121 = arith.constant 5 : index
    %c3_122 = arith.constant 3 : index
    %164 = memref.load %arg1[%c5_121, %c3_122] : memref<8x8xi32, #tpu.memory_space<smem>>
    %165 = arith.index_cast %164 : i32 to index
    %c0_123 = arith.constant 0 : index
    %166 = vector.load %arg2[%165, %c0_123] : memref<64x128xf32, #tpu.memory_space<vmem>>, vector<1x128xf32>
    %c5_124 = arith.constant 5 : index
    %c4_125 = arith.constant 4 : index
    %167 = memref.load %arg1[%c5_124, %c4_125] : memref<8x8xi32, #tpu.memory_space<smem>>
    %168 = arith.index_cast %167 : i32 to index
    %c0_126 = arith.constant 0 : index
    %169 = vector.load %arg2[%168, %c0_126] : memref<64x128xf32, #tpu.memory_space<vmem>>, vector<1x128xf32>
    %c5_127 = arith.constant 5 : index
    %c5_128 = arith.constant 5 : index
    %170 = memref.load %arg1[%c5_127, %c5_128] : memref<8x8xi32, #tpu.memory_space<smem>>
    %171 = arith.index_cast %170 : i32 to index
    %c0_129 = arith.constant 0 : index
    %172 = vector.load %arg2[%171, %c0_129] : memref<64x128xf32, #tpu.memory_space<vmem>>, vector<1x128xf32>
    %c5_130 = arith.constant 5 : index
    %c6_131 = arith.constant 6 : index
    %173 = memref.load %arg1[%c5_130, %c6_131] : memref<8x8xi32, #tpu.memory_space<smem>>
    %174 = arith.index_cast %173 : i32 to index
    %c0_132 = arith.constant 0 : index
    %175 = vector.load %arg2[%174, %c0_132] : memref<64x128xf32, #tpu.memory_space<vmem>>, vector<1x128xf32>
    %c5_133 = arith.constant 5 : index
    %c7_134 = arith.constant 7 : index
    %176 = memref.load %arg1[%c5_133, %c7_134] : memref<8x8xi32, #tpu.memory_space<smem>>
    %177 = arith.index_cast %176 : i32 to index
    %c0_135 = arith.constant 0 : index
    %178 = vector.load %arg2[%177, %c0_135] : memref<64x128xf32, #tpu.memory_space<vmem>>, vector<1x128xf32>
    %179 = arith.maximumf %157, %160 : vector<1x128xf32>
    %180 = arith.maximumf %163, %166 : vector<1x128xf32>
    %181 = arith.maximumf %169, %172 : vector<1x128xf32>
    %182 = arith.maximumf %175, %178 : vector<1x128xf32>
    %183 = arith.maximumf %179, %180 : vector<1x128xf32>
    %184 = arith.maximumf %181, %182 : vector<1x128xf32>
    %185 = arith.maximumf %183, %184 : vector<1x128xf32>
    %c6_136 = arith.constant 6 : index
    %c0_137 = arith.constant 0 : index
    %186 = memref.load %arg1[%c6_136, %c0_137] : memref<8x8xi32, #tpu.memory_space<smem>>
    %187 = arith.index_cast %186 : i32 to index
    %c0_138 = arith.constant 0 : index
    %188 = vector.load %arg2[%187, %c0_138] : memref<64x128xf32, #tpu.memory_space<vmem>>, vector<1x128xf32>
    %c6_139 = arith.constant 6 : index
    %c1_140 = arith.constant 1 : index
    %189 = memref.load %arg1[%c6_139, %c1_140] : memref<8x8xi32, #tpu.memory_space<smem>>
    %190 = arith.index_cast %189 : i32 to index
    %c0_141 = arith.constant 0 : index
    %191 = vector.load %arg2[%190, %c0_141] : memref<64x128xf32, #tpu.memory_space<vmem>>, vector<1x128xf32>
    %c6_142 = arith.constant 6 : index
    %c2_143 = arith.constant 2 : index
    %192 = memref.load %arg1[%c6_142, %c2_143] : memref<8x8xi32, #tpu.memory_space<smem>>
    %193 = arith.index_cast %192 : i32 to index
    %c0_144 = arith.constant 0 : index
    %194 = vector.load %arg2[%193, %c0_144] : memref<64x128xf32, #tpu.memory_space<vmem>>, vector<1x128xf32>
    %c6_145 = arith.constant 6 : index
    %c3_146 = arith.constant 3 : index
    %195 = memref.load %arg1[%c6_145, %c3_146] : memref<8x8xi32, #tpu.memory_space<smem>>
    %196 = arith.index_cast %195 : i32 to index
    %c0_147 = arith.constant 0 : index
    %197 = vector.load %arg2[%196, %c0_147] : memref<64x128xf32, #tpu.memory_space<vmem>>, vector<1x128xf32>
    %c6_148 = arith.constant 6 : index
    %c4_149 = arith.constant 4 : index
    %198 = memref.load %arg1[%c6_148, %c4_149] : memref<8x8xi32, #tpu.memory_space<smem>>
    %199 = arith.index_cast %198 : i32 to index
    %c0_150 = arith.constant 0 : index
    %200 = vector.load %arg2[%199, %c0_150] : memref<64x128xf32, #tpu.memory_space<vmem>>, vector<1x128xf32>
    %c6_151 = arith.constant 6 : index
    %c5_152 = arith.constant 5 : index
    %201 = memref.load %arg1[%c6_151, %c5_152] : memref<8x8xi32, #tpu.memory_space<smem>>
    %202 = arith.index_cast %201 : i32 to index
    %c0_153 = arith.constant 0 : index
    %203 = vector.load %arg2[%202, %c0_153] : memref<64x128xf32, #tpu.memory_space<vmem>>, vector<1x128xf32>
    %c6_154 = arith.constant 6 : index
    %c6_155 = arith.constant 6 : index
    %204 = memref.load %arg1[%c6_154, %c6_155] : memref<8x8xi32, #tpu.memory_space<smem>>
    %205 = arith.index_cast %204 : i32 to index
    %c0_156 = arith.constant 0 : index
    %206 = vector.load %arg2[%205, %c0_156] : memref<64x128xf32, #tpu.memory_space<vmem>>, vector<1x128xf32>
    %c6_157 = arith.constant 6 : index
    %c7_158 = arith.constant 7 : index
    %207 = memref.load %arg1[%c6_157, %c7_158] : memref<8x8xi32, #tpu.memory_space<smem>>
    %208 = arith.index_cast %207 : i32 to index
    %c0_159 = arith.constant 0 : index
    %209 = vector.load %arg2[%208, %c0_159] : memref<64x128xf32, #tpu.memory_space<vmem>>, vector<1x128xf32>
    %210 = arith.maximumf %188, %191 : vector<1x128xf32>
    %211 = arith.maximumf %194, %197 : vector<1x128xf32>
    %212 = arith.maximumf %200, %203 : vector<1x128xf32>
    %213 = arith.maximumf %206, %209 : vector<1x128xf32>
    %214 = arith.maximumf %210, %211 : vector<1x128xf32>
    %215 = arith.maximumf %212, %213 : vector<1x128xf32>
    %216 = arith.maximumf %214, %215 : vector<1x128xf32>
    %c7_160 = arith.constant 7 : index
    %c0_161 = arith.constant 0 : index
    %217 = memref.load %arg1[%c7_160, %c0_161] : memref<8x8xi32, #tpu.memory_space<smem>>
    %218 = arith.index_cast %217 : i32 to index
    %c0_162 = arith.constant 0 : index
    %219 = vector.load %arg2[%218, %c0_162] : memref<64x128xf32, #tpu.memory_space<vmem>>, vector<1x128xf32>
    %c7_163 = arith.constant 7 : index
    %c1_164 = arith.constant 1 : index
    %220 = memref.load %arg1[%c7_163, %c1_164] : memref<8x8xi32, #tpu.memory_space<smem>>
    %221 = arith.index_cast %220 : i32 to index
    %c0_165 = arith.constant 0 : index
    %222 = vector.load %arg2[%221, %c0_165] : memref<64x128xf32, #tpu.memory_space<vmem>>, vector<1x128xf32>
    %c7_166 = arith.constant 7 : index
    %c2_167 = arith.constant 2 : index
    %223 = memref.load %arg1[%c7_166, %c2_167] : memref<8x8xi32, #tpu.memory_space<smem>>
    %224 = arith.index_cast %223 : i32 to index
    %c0_168 = arith.constant 0 : index
    %225 = vector.load %arg2[%224, %c0_168] : memref<64x128xf32, #tpu.memory_space<vmem>>, vector<1x128xf32>
    %c7_169 = arith.constant 7 : index
    %c3_170 = arith.constant 3 : index
    %226 = memref.load %arg1[%c7_169, %c3_170] : memref<8x8xi32, #tpu.memory_space<smem>>
    %227 = arith.index_cast %226 : i32 to index
    %c0_171 = arith.constant 0 : index
    %228 = vector.load %arg2[%227, %c0_171] : memref<64x128xf32, #tpu.memory_space<vmem>>, vector<1x128xf32>
    %c7_172 = arith.constant 7 : index
    %c4_173 = arith.constant 4 : index
    %229 = memref.load %arg1[%c7_172, %c4_173] : memref<8x8xi32, #tpu.memory_space<smem>>
    %230 = arith.index_cast %229 : i32 to index
    %c0_174 = arith.constant 0 : index
    %231 = vector.load %arg2[%230, %c0_174] : memref<64x128xf32, #tpu.memory_space<vmem>>, vector<1x128xf32>
    %c7_175 = arith.constant 7 : index
    %c5_176 = arith.constant 5 : index
    %232 = memref.load %arg1[%c7_175, %c5_176] : memref<8x8xi32, #tpu.memory_space<smem>>
    %233 = arith.index_cast %232 : i32 to index
    %c0_177 = arith.constant 0 : index
    %234 = vector.load %arg2[%233, %c0_177] : memref<64x128xf32, #tpu.memory_space<vmem>>, vector<1x128xf32>
    %c7_178 = arith.constant 7 : index
    %c6_179 = arith.constant 6 : index
    %235 = memref.load %arg1[%c7_178, %c6_179] : memref<8x8xi32, #tpu.memory_space<smem>>
    %236 = arith.index_cast %235 : i32 to index
    %c0_180 = arith.constant 0 : index
    %237 = vector.load %arg2[%236, %c0_180] : memref<64x128xf32, #tpu.memory_space<vmem>>, vector<1x128xf32>
    %c7_181 = arith.constant 7 : index
    %c7_182 = arith.constant 7 : index
    %238 = memref.load %arg1[%c7_181, %c7_182] : memref<8x8xi32, #tpu.memory_space<smem>>
    %239 = arith.index_cast %238 : i32 to index
    %c0_183 = arith.constant 0 : index
    %240 = vector.load %arg2[%239, %c0_183] : memref<64x128xf32, #tpu.memory_space<vmem>>, vector<1x128xf32>
    %241 = arith.maximumf %219, %222 : vector<1x128xf32>
    %242 = arith.maximumf %225, %228 : vector<1x128xf32>
    %243 = arith.maximumf %231, %234 : vector<1x128xf32>
    %244 = arith.maximumf %237, %240 : vector<1x128xf32>
    %245 = arith.maximumf %241, %242 : vector<1x128xf32>
    %246 = arith.maximumf %243, %244 : vector<1x128xf32>
    %247 = arith.maximumf %245, %246 : vector<1x128xf32>
    %248 = tpu.concatenate %30, %61, %92, %123, %154, %185, %216, %247 in 0 : vector<1x128xf32>, vector<1x128xf32>, vector<1x128xf32>, vector<1x128xf32>, vector<1x128xf32>, vector<1x128xf32>, vector<1x128xf32>, vector<1x128xf32> -> vector<8x128xf32>
    %c0_184 = arith.constant 0 : index
    %c0_185 = arith.constant 0 : index
    %249 = vector.load %arg3[%c0_184, %c0_185] : memref<128x128xf32, #tpu.memory_space<vmem>>, vector<128x128xf32>
    %cst = arith.constant dense<0.000000e+00> : vector<8x128xf32>
    %250 = tpu.matmul %248, %249, %cst {dimension_numbers = #tpu.dot_dimension_numbers<[1], [0], [0], [1], [0, 0, 1, 1], [], []>} : vector<8x128xf32>, vector<128x128xf32>, vector<8x128xf32> -> vector<8x128xf32>
    %c0_186 = arith.constant 0 : index
    %c0_187 = arith.constant 0 : index
    %251 = vector.load %arg4[%c0_186, %c0_187] : memref<1x128xf32, #tpu.memory_space<vmem>>, vector<1x128xf32>
    %252 = vector.broadcast %251 : vector<1x128xf32> to vector<8x128xf32>
    %253 = arith.addf %250, %252 : vector<8x128xf32>
    %cst_188 = arith.constant 0.000000e+00 : f32
    %254 = vector.broadcast %cst_188 : f32 to vector<8x128xf32>
    %255 = arith.maximumf %253, %254 : vector<8x128xf32>
    %c0_189 = arith.constant 0 : index
    %c0_190 = arith.constant 0 : index
    %256 = vector.load %arg5[%c0_189, %c0_190] : memref<128x128xf32, #tpu.memory_space<vmem>>, vector<128x128xf32>
    %cst_191 = arith.constant dense<0.000000e+00> : vector<8x128xf32>
    %257 = tpu.matmul %255, %256, %cst_191 {dimension_numbers = #tpu.dot_dimension_numbers<[1], [0], [0], [1], [0, 0, 1, 1], [], []>} : vector<8x128xf32>, vector<128x128xf32>, vector<8x128xf32> -> vector<8x128xf32>
    %c0_192 = arith.constant 0 : index
    %c0_193 = arith.constant 0 : index
    %258 = vector.load %arg6[%c0_192, %c0_193] : memref<1x128xf32, #tpu.memory_space<vmem>>, vector<1x128xf32>
    %259 = vector.broadcast %258 : vector<1x128xf32> to vector<8x128xf32>
    %260 = arith.addf %257, %259 : vector<8x128xf32>
    %cst_194 = arith.constant 0.000000e+00 : f32
    %261 = vector.broadcast %cst_194 : f32 to vector<8x128xf32>
    %262 = arith.maximumf %260, %261 : vector<8x128xf32>
    %c0_195 = arith.constant 0 : index
    %c0_196 = arith.constant 0 : index
    %263 = vector.load %arg7[%c0_195, %c0_196] : memref<128x128xf32, #tpu.memory_space<vmem>>, vector<128x128xf32>
    %cst_197 = arith.constant dense<0.000000e+00> : vector<8x128xf32>
    %264 = tpu.matmul %262, %263, %cst_197 {dimension_numbers = #tpu.dot_dimension_numbers<[1], [0], [0], [1], [0, 0, 1, 1], [], []>} : vector<8x128xf32>, vector<128x128xf32>, vector<8x128xf32> -> vector<8x128xf32>
    %c0_198 = arith.constant 0 : index
    %c0_199 = arith.constant 0 : index
    %265 = vector.load %arg8[%c0_198, %c0_199] : memref<1x128xf32, #tpu.memory_space<vmem>>, vector<1x128xf32>
    %266 = vector.broadcast %265 : vector<1x128xf32> to vector<8x128xf32>
    %267 = arith.addf %264, %266 : vector<8x128xf32>
    %cst_200 = arith.constant dense<0xFF800000> : vector<8xf32>
    %268 = vector.multi_reduction <maximumf>, %267, %cst_200 [1] : vector<8x128xf32> to vector<8xf32>
    %269 = vector.shape_cast %268 : vector<8xf32> to vector<8x1xf32>
    %270 = vector.broadcast %269 : vector<8x1xf32> to vector<8x128xf32>
    %271 = arith.subf %267, %270 : vector<8x128xf32>
    %272 = math.exp %271 : vector<8x128xf32>
    %cst_201 = arith.constant dense<0.000000e+00> : vector<8xf32>
    %273 = vector.multi_reduction <add>, %272, %cst_201 [1] : vector<8x128xf32> to vector<8xf32>
    %274 = vector.shape_cast %273 : vector<8xf32> to vector<8x1xf32>
    %275 = tpu.reciprocal %274 {approx = true} : vector<8x1xf32> -> vector<8x1xf32>
    %276 = arith.mulf %274, %275 : vector<8x1xf32>
    %cst_202 = arith.constant 2.000000e+00 : f32
    %277 = vector.broadcast %cst_202 : f32 to vector<8x1xf32>
    %278 = arith.subf %277, %276 : vector<8x1xf32>
    %279 = arith.mulf %275, %278 : vector<8x1xf32>
    %280 = vector.broadcast %279 : vector<8x1xf32> to vector<8x128xf32>
    %281 = arith.mulf %272, %280 : vector<8x128xf32>
    %c0_203 = arith.constant 0 : index
    %c0_204 = arith.constant 0 : index
    %282 = vector.load %arg9[%c0_203, %c0_204] : memref<8x128xf32, #tpu.memory_space<vmem>>, vector<8x128xf32>
    tpu.vector_store %arg9[%c0_203, %c0_204], %281 {strides = array<i32>} : memref<8x128xf32, #tpu.memory_space<vmem>>, vector<8x128xf32>,
    return
  }
  func.func @transform_0(%arg0: i32) -> (i32, i32) {
    %c0_i32 = arith.constant 0 : i32
    %c0_i32_0 = arith.constant 0 : i32
    return %arg0, %c0_i32 : i32, i32
  }
  func.func @transform_1(%arg0: i32) -> (i32, i32) {
    %c0_i32 = arith.constant 0 : i32
    %c0_i32_0 = arith.constant 0 : i32
    %c0_i32_1 = arith.constant 0 : i32
    return %c0_i32, %c0_i32_0 : i32, i32
  }
  func.func @transform_2(%arg0: i32) -> (i32, i32) {
    %c0_i32 = arith.constant 0 : i32
    %c0_i32_0 = arith.constant 0 : i32
    %c0_i32_1 = arith.constant 0 : i32
    return %c0_i32, %c0_i32_0 : i32, i32
  }
  func.func @transform_3(%arg0: i32) -> (i32, i32) {
    %c0_i32 = arith.constant 0 : i32
    %c0_i32_0 = arith.constant 0 : i32
    %c0_i32_1 = arith.constant 0 : i32
    return %c0_i32, %c0_i32_0 : i32, i32
  }
  func.func @transform_4(%arg0: i32) -> (i32, i32) {
    %c0_i32 = arith.constant 0 : i32
    %c0_i32_0 = arith.constant 0 : i32
    %c0_i32_1 = arith.constant 0 : i32
    return %c0_i32, %c0_i32_0 : i32, i32
  }
  func.func @transform_5(%arg0: i32) -> (i32, i32) {
    %c0_i32 = arith.constant 0 : i32
    %c0_i32_0 = arith.constant 0 : i32
    %c0_i32_1 = arith.constant 0 : i32
    return %c0_i32, %c0_i32_0 : i32, i32
  }
  func.func @transform_6(%arg0: i32) -> (i32, i32) {
    %c0_i32 = arith.constant 0 : i32
    %c0_i32_0 = arith.constant 0 : i32
    %c0_i32_1 = arith.constant 0 : i32
    return %c0_i32, %c0_i32_0 : i32, i32
  }
  func.func @transform_7(%arg0: i32) -> (i32, i32) {
    %c0_i32 = arith.constant 0 : i32
    %c0_i32_0 = arith.constant 0 : i32
    %c0_i32_1 = arith.constant 0 : i32
    return %c0_i32, %c0_i32_0 : i32, i32
  }
  func.func @transform_8(%arg0: i32) -> (i32, i32) {
    %c0_i32 = arith.constant 0 : i32
    %c0_i32_0 = arith.constant 0 : i32
    return %arg0, %c0_i32 : i32, i32
  }
}

</mosaic_0001>

<bundles_post_ra>
// kernel: tpu_custom_call.1
= control target key start
LH: loop header
LB: loop body
LE: loop exit
PB: predicated region body
PF: predicated region fallthrough
CT: control target
= control target key end

     0   :  { %s1651_s0 = inlined_call_operand.hbm [shape: s32[8,8], index: 0, kind: input, shape index: {}]   ;;  %s1652_s1 = inlined_call_operand.hbm [shape: f32[64,128], index: 1, kind: input, shape index: {}]   ;;  %s1653_s2 = inlined_call_operand.hbm [shape: f32[128,128], index: 2, kind: input, shape index: {}]   ;;  %s1654_s3 = inlined_call_operand.vmem [shape: f32[1,128], index: 3, kind: input, shape index: {}]   ;;  %s1655_s4 = inlined_call_operand.hbm [shape: f32[128,128], index: 4, kind: input, shape index: {}]   ;;  %s1656_s5 = inlined_call_operand.vmem [shape: f32[1,128], index: 5, kind: input, shape index: {}]   ;;  %s1657_s6 = inlined_call_operand.hbm [shape: f32[128,128], index: 6, kind: input, shape index: {}]   ;;  %s1658_s7 = inlined_call_operand.vmem [shape: f32[1,128], index: 7, kind: input, shape index: {}]   ;;  %s1659_s8 = inlined_call_operand.hbm [shape: f32[8,128], index: 8, kind: output, shape index: {}]  }
   0x1   :  { %1661 = sst [smem:[#allocation32_spill]] %s1654_s3 }
   0x2   :  { %1662 = sst [smem:[#allocation33_spill]] %s1656_s5 }
   0x3   :  { %1663 = sst [smem:[#allocation34_spill]] %s1658_s7 }
   0x4   :  { %1664 = sst [smem:[#allocation35_spill]] %s1659_s8 }
   0x5   :  { %13 = vsyncpa [#allocation6], 0 }
   0x6   :  { %14 = vsyncpa [#allocation4], 0 }
   0x7   :  { %15 = vsyncpa [#allocation9], 0 }
   0x8   :  { %16 = vsyncpa [#allocation12], 0 }
   0x9   :  { %17 = vsyncpa [#allocation5], 0  ;;  %s1194_s27 = smov [#allocation8]   ;;  %s1195_s29 = smov [#allocation7]  }
   0xa   :  { %s43_s28 = sshll.u32 %s1194_s27, 4  ;;  %s31_s30 = sshll.u32 %s1195_s29, 4  ;;  %s44_s28 = int_to_ptr.vmem [resolvable:$true] %s43_s28  ;;  %s32_s30 = int_to_ptr.vmem [resolvable:$true] %s31_s30 }
   0xb   :  { %s1064_s11 = scalar_lea.hbm %s1653_s2, 2048 }
   0xc   :  { %p1065_p0 = scmp.ne.s32.totalorder %s1653_s2, %s1064_s11  ;;  %p1068_p1 = scmp.lt.u32.totalorder %s1064_s11, %s1653_s2 }
   0xe   :  { %p1070_p2 = pnand %p1068_p1, %p1065_p0 }
  0x10   :  { %1073 = shalt.err (!%p1070_p2)
}
  0x11   :  { %s1074_s16 = scalar_lea.vmem %s44_s28, 2048  ;;  %p1079_p4 = scmp.lt.s32.totalorder %s44_s28, %s44_s28 }
  0x12   :  { %p1075_p3 = scmp.ne.s32.totalorder %s44_s28, %s1074_s16  ;;  %p1080_p5 = scmp.lt.s32.totalorder %s1074_s16, %s1074_s16 }
  0x14   :  { %p1081_p6 = por %p1080_p5, %p1079_p4 }
  0x16   :  { %p1082_p7 = pnand %p1081_p6, %p1075_p3 }
  0x18   :  { %1085 = shalt.err (!%p1082_p7)
}
  0x19   :  { %s1196_s17 = smov 128   ;;  %s1197_s18 = smov 8  }
  0x1a   :  { %49 = dma.hbm_to_vmem [thread:$0]  %s1653_s2, 2048, %s44_s28, [#allocation9], %s1196_s17, %s1196_s17, %s1197_s18  }
  0x1b   :  { %s1086_s23 = scalar_lea.hbm %s1651_s0, 128 }
  0x1c   :  { %p1087_p8 = scmp.ne.s32.totalorder %s1651_s0, %s1086_s23  ;;  %p1090_p9 = scmp.lt.u32.totalorder %s1086_s23, %s1651_s0 }
  0x1e   :  { %p1092_p10 = pnand %p1090_p9, %p1087_p8 }
  0x20   :  { %1095 = shalt.err (!%p1092_p10)
}
  0x21   :  { %s1198_s29 = smov [#allocation3]   ;;  %s1096_s11 = scalar_lea.hbm %s1652_s1, 1024 }
  0x22   :  { %25 = dma.hbm_to_smem %s1651_s0, 128, %s1198_s29, [#allocation6]  }
  0x23   :  { %p1097_p11 = scmp.ne.s32.totalorder %s1652_s1, %s1096_s11  ;;  %p1100_p12 = scmp.lt.u32.totalorder %s1096_s11, %s1652_s1 }
  0x25   :  { %p1102_p13 = pnand %p1100_p12, %p1097_p11 }
  0x27   :  { %1105 = shalt.err (!%p1102_p13)
}
  0x28   :  { %s1106_s16 = scalar_lea.vmem %s32_s30, 1024  ;;  %p1111_p1 = scmp.lt.s32.totalorder %s32_s30, %s32_s30 }
  0x29   :  { %p1107_p0 = scmp.ne.s32.totalorder %s32_s30, %s1106_s16  ;;  %p1112_p2 = scmp.lt.s32.totalorder %s1106_s16, %s1106_s16 }
  0x2b   :  { %p1113_p3 = por %p1112_p2, %p1111_p1 }
  0x2d   :  { %p1114_p4 = pnand %p1113_p3, %p1107_p0 }
  0x2f   :  { %1117 = shalt.err (!%p1114_p4)
}
  0x30   :  { %37 = dma.hbm_to_vmem [thread:$0]  %s1652_s1, 1024, %s32_s30, [#allocation4], %s1196_s17, %s1196_s17, %s1197_s18  }
  0x31   :  { %s1199_s20 = smov [#allocation10]   ;;  %s1200_s22 = smov [#allocation11]  }
  0x32   :  { %s57_s21 = sshll.u32 %s1199_s20, 4  ;;  %s71_s23 = sshll.u32 %s1200_s22, 4  ;;  %s58_s21 = int_to_ptr.vmem [resolvable:$true] %s57_s21  ;;  %s72_s23 = int_to_ptr.vmem [resolvable:$true] %s71_s23 }
  0x33   :  { %s1118_s26 = scalar_lea.hbm %s1655_s4, 2048 }
  0x34   :  { %p1119_p5 = scmp.ne.s32.totalorder %s1655_s4, %s1118_s26  ;;  %p1122_p6 = scmp.lt.u32.totalorder %s1118_s26, %s1655_s4 }
  0x36   :  { %p1124_p7 = pnand %p1122_p6, %p1119_p5 }
  0x38   :  { %1127 = shalt.err (!%p1124_p7)
}
  0x39   :  { %s1128_s1 = scalar_lea.vmem %s58_s21, 2048  ;;  %p1133_p9 = scmp.lt.s32.totalorder %s58_s21, %s58_s21 }
  0x3a   :  { %p1129_p8 = scmp.ne.s32.totalorder %s58_s21, %s1128_s1  ;;  %p1134_p10 = scmp.lt.s32.totalorder %s1128_s1, %s1128_s1 }
  0x3c   :  { %p1135_p11 = por %p1134_p10, %p1133_p9 }
  0x3e   :  { %p1136_p12 = pnand %p1135_p11, %p1129_p8 }
  0x40   :  { %1139 = shalt.err (!%p1136_p12)
}
  0x41   :  { %63 = dma.hbm_to_vmem [thread:$0]  %s1655_s4, 2048, %s58_s21, [#allocation9], %s1196_s17, %s1196_s17, %s1197_s18  }
  0x42   :  { %s1140_s12 = scalar_lea.hbm %s1657_s6, 2048 }
  0x43   :  { %p1141_p13 = scmp.ne.s32.totalorder %s1657_s6, %s1140_s12  ;;  %p1144_p0 = scmp.lt.u32.totalorder %s1140_s12, %s1657_s6 }
  0x45   :  { %p1146_p1 = pnand %p1144_p0, %p1141_p13 }
  0x47   :  { %1149 = shalt.err (!%p1146_p1)
}
  0x48   :  { %s1150_s0 = scalar_lea.vmem %s72_s23, 2048  ;;  %p1155_p3 = scmp.lt.s32.totalorder %s72_s23, %s72_s23 }
  0x49   :  { %p1151_p2 = scmp.ne.s32.totalorder %s72_s23, %s1150_s0  ;;  %p1156_p4 = scmp.lt.s32.totalorder %s1150_s0, %s1150_s0 }
  0x4b   :  { %p1157_p5 = por %p1156_p4, %p1155_p3 }
  0x4d   :  { %p1158_p6 = pnand %p1157_p5, %p1151_p2 }
  0x4f   :  { %1161 = shalt.err (!%p1158_p6)
}
  0x50   :  { %77 = dma.hbm_to_vmem [thread:$0]  %s1657_s6, 2048, %s72_s23, [#allocation12], %s1196_s17, %s1196_s17, %s1197_s18  }
  0x51   :  { %1184 = dma.done.wait [#allocation6], 128  }
  0x52   :  { %1185 = vsyncadd [#allocation6], 4294967168 }
  0x53   :  { %1186 = dma.done.wait [#allocation4], 1024  }
  0x54   :  { %1187 = vsyncadd [#allocation4], 4294966272 }
  0x55   :  { %1188 = dma.done.wait [#allocation9], 4096  }
  0x56   :  { %1189 = vsyncadd [#allocation9], 4294963200 }
  0x57   :  { %1190 = dma.done.wait [#allocation12], 2048  }
  0x58   :  { %1191 = vsyncadd [#allocation12], 4294965248 }
  0x59   :  { %95 = sfence }
  0x5a   :  { %v379_v0 = vld [vmem:[#allocation8] sm:$0xff]  ;;  %v380_v1 = vld [vmem:[#allocation8 + $0x8] sm:$0xff]  ;;  %v381_v2 = vld [vmem:[#allocation8 + $0x10] sm:$0xff]  ;;  %v1201_v3 = vmov 0.0|0.0   ;;  %vm1202_vm0 = vmmov 0   ;;  %v1203_v6 = vmov 0.0  }
  0x5b   :  { %977 = vmatprep.subr.bf16.mxu0 %v1201_v3  ;;  %v978_v4 = vpack.c.bf16 %v380_v1, %v379_v0  ;;  %v382_v5 = vld [vmem:[#allocation8 + $0x18] sm:$0xff]  ;;  %904 = vmatprep.mubr.msk.f32.mxu0 %vm1202_vm0, %v1203_v6  ;;  %s1325_s6 = sld [smem:[#allocation3]]  ;;  %s1327_s17 = sld [smem:[#allocation3 + $0x1]]  ;;  %v383_v8 = vld [vmem:[#allocation8 + $0x20] sm:$0xff]  ;;  %v384_v9 = vld [vmem:[#allocation8 + $0x28] sm:$0xff]  ;;  %vm365_vm1 = vcmask 1040384  }
  0x5c   :  { %1001 = vmatprep.subr.bf16.mxu1 %v1201_v3  ;;  %939 = vmatprep.mubr.msk.f32.mxu1 %vm1202_vm0, %v1203_v6  ;;  %v981_v7 = vpack.c.bf16 %v382_v5, %v381_v2  ;;  %s1332_s18 = sld [smem:[#allocation3 + $0x2]]  ;;  %s1335_s20 = sld [smem:[#allocation3 + $0x3]]  ;;  %v984_v10 = vpack.c.bf16 %v384_v9, %v383_v8  ;;  %v473_v11 = vld [vmem:[#allocation10] sm:$0xff]  ;;  %v474_v12 = vld [vmem:[#allocation10 + $0x8] sm:$0xff]  ;;  %v475_v13 = vld [vmem:[#allocation10 + $0x10] sm:$0xff]  ;;  %vm367_vm2 = vcmask 1041408  }
  0x5d   :  { %979 = vmatpush3.bf16.msra.mxu0 %v978_v4  ;;  %s1337_s21 = sld [smem:[#allocation3 + $0x4]]  ;;  %s1339_s22 = sld [smem:[#allocation3 + $0x5]]  ;;  %v385_v14 = vld [vmem:[#allocation8 + $0x30] sm:$0xff]  ;;  %v386_v15 = vld [vmem:[#allocation8 + $0x38] sm:$0xff]  ;;  %v1002_v16 = vpack.c.bf16 %v474_v12, %v473_v11  ;;  %v477_v20 = vld [vmem:[#allocation10 + $0x20] sm:$0xff]  ;;  %vm369_vm3 = vcmask 1042432  }
  0x5e   :  { %980 = vmatprep.subr.bf16.mxu0 %v1201_v3  ;;  %s1341_s23 = sld [smem:[#allocation3 + $0x6]]  ;;  %s1343_s24 = sld [smem:[#allocation3 + $0x7]]  ;;  %v476_v17 = vld [vmem:[#allocation10 + $0x18] sm:$0xff]  ;;  %v987_v19 = vpack.c.bf16 %v386_v15, %v385_v14  ;;  %v478_v21 = vld [vmem:[#allocation10 + $0x28] sm:$0xff]  ;;  %v387_v22 = vld [vmem:[#allocation8 + $0x40] sm:$0xff]  ;;  %vm371_vm4 = vcmask 1043456  }
  0x5f   :  { %s1346_s25 = sld [smem:[#allocation3 + $0x80]]  ;;  %s1348_s26 = sld [smem:[#allocation3 + $0x81]]  ;;  %1003 = vmatpush3.bf16.msra.mxu1 %v1002_v16  ;;  %v1005_v18 = vpack.c.bf16 %v476_v17, %v475_v13  ;;  %v388_v23 = vld [vmem:[#allocation8 + $0x48] sm:$0xff]  ;;  %v1008_v24 = vpack.c.bf16 %v478_v21, %v477_v20  ;;  %v479_v26 = vld [vmem:[#allocation10 + $0x30] sm:$0xff]  ;;  %v480_v27 = vld [vmem:[#allocation10 + $0x38] sm:$0xff]  ;;  %vm373_vm5 = vcmask 1044480  }
  0x60   :  { %s1350_s27 = sld [smem:[#allocation3 + $0x82]]  ;;  %1004 = vmatprep.subr.bf16.mxu1 %v1201_v3  ;;  %s1354_s29 = sld [smem:[#allocation3 + $0x83]]  ;;  %v990_v25 = vpack.c.bf16 %v388_v23, %v387_v22  ;;  %v389_v28 = vld [vmem:[#allocation8 + $0x50] sm:$0xff]  ;;  %v390_v29 = vld [vmem:[#allocation8 + $0x58] sm:$0xff]  ;;  %v1011_v30 = vpack.c.bf16 %v480_v27, %v479_v26  ;;  %v481_v32 = vld [vmem:[#allocation10 + $0x40] sm:$0xff]  ;;  %vm375_vm6 = vcmask 1045504  }
  0x61   :  { %982 = vmatpush3.bf16.msra.mxu0 %v981_v7  ;;  %s1356_s9 = sld [smem:[#allocation3 + $0x84]]  ;;  %s1358_s10 = sld [smem:[#allocation3 + $0x85]]  ;;  %v993_v31 = vpack.c.bf16 %v390_v29, %v389_v28  ;;  %v482_v33 = vld [vmem:[#allocation10 + $0x48] sm:$0xff]  ;;  %v391_v34 = vld [vmem:[#allocation8 + $0x60] sm:$0xff]  ;;  %v483_v38 = vld [vmem:[#allocation10 + $0x50] sm:$0xff]  ;;  %vm377_vm7 = vcmask 1046528  }
  0x62   :  { %983 = vmatprep.subr.bf16.mxu0 %v1201_v3  ;;  %s1362_s1 = sld [smem:[#allocation3 + $0x86]]  ;;  %s1364_s30 = sld [smem:[#allocation3 + $0x87]]  ;;  %v392_v35 = vld [vmem:[#allocation8 + $0x68] sm:$0xff]  ;;  %v1014_v36 = vpack.c.bf16 %v482_v33, %v481_v32  ;;  %v484_v39 = vld [vmem:[#allocation10 + $0x58] sm:$0xff]  ;;  %v393_v40 = vld [vmem:[#allocation8 + $0x70] sm:$0xff] }
  0x63   :  { %1006 = vmatpush3.bf16.msra.mxu1 %v1005_v18  ;;  %s1366_s2 = sld [smem:[#allocation3 + $0x100]]  ;;  %s1368_s28 = sld [smem:[#allocation3 + $0x101]]  ;;  %v996_v37 = vpack.c.bf16 %v392_v35, %v391_v34  ;;  %v394_v41 = vld [vmem:[#allocation8 + $0x78] sm:$0xff]  ;;  %v1017_v42 = vpack.c.bf16 %v484_v39, %v483_v38  ;;  %v485_v44 = vld [vmem:[#allocation10 + $0x60] sm:$0xff]  ;;  %v486_v45 = vld [vmem:[#allocation10 + $0x68] sm:$0xff] }
  0x64   :  { %1665 = sst [smem:[#allocation19_spill]] %s1343_s24  ;;  %1007 = vmatprep.subr.bf16.mxu1 %v1201_v3  ;;  %s1370_s11 = sld [smem:[#allocation3 + $0x102]]  ;;  %v999_v43 = vpack.c.bf16 %v394_v41, %v393_v40  ;;  %v1020_v46 = vpack.c.bf16 %v486_v45, %v485_v44 }
  0x65   :  { %985 = vmatpush3.bf16.msra.mxu0 %v984_v10  ;;  %s1372_s12 = sld [smem:[#allocation3 + $0x103]]  ;;  %s1374_s13 = sld [smem:[#allocation3 + $0x104]] }
  0x66   :  { %986 = vmatprep.subr.bf16.mxu0 %v1201_v3  ;;  %s1378_s14 = sld [smem:[#allocation3 + $0x105]]  ;;  %s1380_s15 = sld [smem:[#allocation3 + $0x106]] }
  0x67   :  { %1009 = vmatpush3.bf16.msra.mxu1 %v1008_v24  ;;  %s1384_s16 = sld [smem:[#allocation3 + $0x107]]  ;;  %s1386_s0 = sld [smem:[#allocation3 + $0x180]] }
  0x68   :  { %1010 = vmatprep.subr.bf16.mxu1 %v1201_v3  ;;  %s1390_s4 = sld [smem:[#allocation3 + $0x181]]  ;;  %s1392_s19 = sld [smem:[#allocation3 + $0x182]] }
  0x69   :  { %988 = vmatpush3.bf16.msra.mxu0 %v987_v19  ;;  %s1394_s8 = sld [smem:[#allocation3 + $0x183]]  ;;  %s1396_s7 = sld [smem:[#allocation3 + $0x184]] }
  0x6a   :  { %989 = vmatprep.subr.bf16.mxu0 %v1201_v3  ;;  %s1398_s5 = sld [smem:[#allocation3 + $0x185]]  ;;  %s1400_s3 = sld [smem:[#allocation3 + $0x186]] }
  0x6b   :  { %1012 = vmatpush3.bf16.msra.mxu1 %v1011_v30  ;;  %s1425_s24 = sld [smem:[#allocation3 + $0x205]] }
  0x6c   :  { %1013 = vmatprep.subr.bf16.mxu1 %v1201_v3 }
  0x6d   :  { %991 = vmatpush3.bf16.msra.mxu0 %v990_v25  ;;  %1666 = sst [smem:[#allocation20_spill]] %s1386_s0  ;;  %s1402_s0 = sld [smem:[#allocation3 + $0x187]] }
  0x6e   :  { %992 = vmatprep.subr.bf16.mxu0 %v1201_v3  ;;  %1667 = sst [smem:[#allocation21_spill]] %s1390_s4  ;;  %s1421_s4 = sld [smem:[#allocation3 + $0x204]] }
  0x6f   :  { %1015 = vmatpush3.bf16.msra.mxu1 %v1014_v36  ;;  %1668 = sst [smem:[#allocation22_spill]] %s1392_s19  ;;  %s1405_s19 = sld [smem:[#allocation3 + $0x200]] }
  0x70   :  { %1016 = vmatprep.subr.bf16.mxu1 %v1201_v3  ;;  %1669 = sst [smem:[#allocation23_spill]] %s1394_s8  ;;  %s1407_s8 = sld [smem:[#allocation3 + $0x201]] }
  0x71   :  { %994 = vmatpush3.bf16.msra.mxu0 %v993_v31  ;;  %1670 = sst [smem:[#allocation24_spill]] %s1396_s7  ;;  %s1412_s7 = sld [smem:[#allocation3 + $0x203]] }
  0x72   :  { %995 = vmatprep.subr.bf16.mxu0 %v1201_v3  ;;  %1671 = sst [smem:[#allocation25_spill]] %s1398_s5  ;;  %s1410_s5 = sld [smem:[#allocation3 + $0x202]] }
  0x73   :  { %1018 = vmatpush3.bf16.msra.mxu1 %v1017_v42  ;;  %1672 = sst [smem:[#allocation26_spill]] %s1400_s3  ;;  %s128_s3 = scalar_lea.vmem [#allocation7], %s1346_s25 }
  0x74   :  { %1673 = sst [smem:[#allocation27_spill]] %s1402_s0  ;;  %1019 = vmatprep.subr.bf16.mxu1 %v1201_v3  ;;  %v1416_v47 = vld [vmem:[%s128_s3] sm:$0x1]  ;;  %s131_s0 = scalar_lea.vmem [#allocation7], %s1348_s26 }
  0x75   :  { %997 = vmatpush3.bf16.msra.mxu0 %v996_v37  ;;  %1674 = sst [smem:[#allocation28_spill]] %s1405_s19  ;;  %v132_v48 = vld [vmem:[%s131_s0] sm:$0x1]  ;;  %s134_s19 = scalar_lea.vmem [#allocation7], %s1350_s27 }
  0x76   :  { %998 = vmatprep.subr.bf16.mxu0 %v1201_v3  ;;  %1675 = sst [smem:[#allocation29_spill]] %s1407_s8  ;;  %v135_v49 = vld [vmem:[%s134_s19] sm:$0x1]  ;;  %s137_s8 = scalar_lea.vmem [#allocation7], %s1354_s29  ;;  %v151_v57 = vmax.f32 %v1416_v47, %v132_v48 }
  0x77   :  { %1021 = vmatpush3.bf16.msra.mxu1 %v1020_v46  ;;  %1677 = sst [smem:[#allocation31_spill]] %s1412_s7  ;;  %v138_v50 = vld [vmem:[%s137_s8] sm:$0x1]  ;;  %s143_s7 = scalar_lea.vmem [#allocation7], %s1358_s10 }
  0x78   :  { %1676 = sst [smem:[#allocation30_spill]] %s1410_s5  ;;  %1022 = vmatprep.subr.bf16.mxu1 %v1201_v3  ;;  %s140_s5 = scalar_lea.vmem [#allocation7], %s1356_s9  ;;  %v144_v52 = vld [vmem:[%s143_s7] sm:$0x1]  ;;  %v152_v58 = vmax.f32 %v135_v49, %v138_v50 }
  0x79   :  { %1000 = vmatpush3.bf16.msra.mxu0 %v999_v43  ;;  %v141_v51 = vld [vmem:[%s140_s5] sm:$0x1]  ;;  %s1427_s25 = sld [smem:[#allocation3 + $0x206]]  ;;  %s146_s3 = scalar_lea.vmem [#allocation7], %s1362_s1 }
  0x7a   :  { %1025 = vmatprep.subr.bf16.mxu0 %v1201_v3  ;;  %v147_v53 = vld [vmem:[%s146_s3] sm:$0x1]  ;;  %s1430_s26 = sld [smem:[#allocation3 + $0x207]]  ;;  %s1432_s27 = sld [smem:[#allocation3 + $0x280]]  ;;  %v153_v62 = vmax.f32 %v141_v51, %v144_v52  ;;  %v1490_v13 = vmax.f32 %v151_v57, %v152_v58 }
  0x7b   :  { %s149_s8 = scalar_lea.vmem [#allocation7], %s1364_s30  ;;  %s1435_s29 = sld [smem:[#allocation3 + $0x281]] }
  0x7c   :  { %v150_v54 = vld [vmem:[%s149_s8] sm:$0x1]  ;;  %s1437_s5 = sld [smem:[#allocation3 + $0x282]]  ;;  %s159_s7 = scalar_lea.vmem [#allocation7], %s1366_s2 }
  0x7d   :  { %v1440_v55 = vld [vmem:[%s159_s7] sm:$0x1]  ;;  %s162_s9 = scalar_lea.vmem [#allocation7], %s1368_s28  ;;  %s1445_s10 = sld [smem:[#allocation3 + $0x283]]  ;;  %v154_v63 = vmax.f32 %v147_v53, %v150_v54 }
  0x7e   :  { %v1443_v56 = vld [vmem:[%s162_s9] sm:$0x1]  ;;  %s1447_s1 = sld [smem:[#allocation3 + $0x284]]  ;;  %s165_s30 = scalar_lea.vmem [#allocation7], %s1370_s11 }
  0x7f   :  { %v1451_v59 = vld [vmem:[%s165_s30] sm:$0x1]  ;;  %s168_s2 = scalar_lea.vmem [#allocation7], %s1372_s12  ;;  %s171_s28 = scalar_lea.vmem [#allocation7], %s1374_s13  ;;  %v182_v14 = vmax.f32 %v1440_v55, %v1443_v56  ;;  %v1494_v15 = vmax.f32 %v153_v62, %v154_v63 }
  0x80   :  { %v1454_v60 = vld [vmem:[%s168_s2] sm:$0x1]  ;;  %s1459_s0 = sld [smem:[#allocation3 + $0x285]]  ;;  %s1461_s19 = sld [smem:[#allocation3 + $0x286]] }
  0x81   :  { %v1457_v61 = vld [vmem:[%s171_s28] sm:$0x1]  ;;  %s174_s11 = scalar_lea.vmem [#allocation7], %s1378_s14  ;;  %s1466_s12 = sld [smem:[#allocation3 + $0x287]]  ;;  %v183_v16 = vmax.f32 %v1451_v59, %v1454_v60  ;;  %v157_v37 = vmax.f32 %v1490_v13, %v1494_v15 }
  0x82   :  { %v1464_v0 = vld [vmem:[%s174_s11] sm:$0x1]  ;;  %s97_s3 = scalar_lea.vmem [#allocation7], %s1325_s6  ;;  %s100_s13 = scalar_lea.vmem [#allocation7], %s1327_s17 }
  0x83   :  { %v1469_v1 = vld [vmem:[%s97_s3] sm:$0x1]  ;;  %s1678_s8 = sld [smem:[#allocation19_spill]]  ;;  %s103_s7 = scalar_lea.vmem [#allocation7], %s1332_s18  ;;  %v184_v17 = vmax.f32 %v1457_v61, %v1464_v0  ;;  %v1552_v38 = vmax.f32 %v182_v14, %v183_v16  ;;  %v345_v63 = vrot.slane %v157_v37, 7 }
  0x84   :  { %v1472_v2 = vld [vmem:[%s100_s13] sm:$0x1]  ;;  %s106_s9 = scalar_lea.vmem [#allocation7], %s1335_s20  ;;  %s177_s14 = scalar_lea.vmem [#allocation7], %s1380_s15 }
  0x85   :  { %v1475_v4 = vld [vmem:[%s103_s7] sm:$0x1]  ;;  %s180_s30 = scalar_lea.vmem [#allocation7], %s1384_s16  ;;  %s1679_s2 = sld [smem:[#allocation20_spill]]  ;;  %v120_v25 = vmax.f32 %v1469_v1, %v1472_v2 }
  0x86   :  { %v1478_v5 = vld [vmem:[%s106_s9] sm:$0x1]  ;;  %s109_s28 = scalar_lea.vmem [#allocation7], %s1337_s21  ;;  %s1680_s6 = sld [smem:[#allocation21_spill]] }
  0x87   :  { %v178_v7 = vld [vmem:[%s177_s14] sm:$0x1]  ;;  %s112_s11 = scalar_lea.vmem [#allocation7], %s1339_s22  ;;  %s1681_s17 = sld [smem:[#allocation22_spill]]  ;;  %v121_v26 = vmax.f32 %v1475_v4, %v1478_v5 }
  0x88   :  { %v181_v8 = vld [vmem:[%s180_s30] sm:$0x1]  ;;  %s115_s3 = scalar_lea.vmem [#allocation7], %s1341_s23  ;;  %s1682_s18 = sld [smem:[#allocation23_spill]] }
  0x89   :  { %v1483_v9 = vld [vmem:[%s109_s28] sm:$0x1]  ;;  %s118_s13 = scalar_lea.vmem [#allocation7], %s1678_s8  ;;  %s1683_s20 = sld [smem:[#allocation24_spill]]  ;;  %v185_v18 = vmax.f32 %v178_v7, %v181_v8  ;;  %v1573_v46 = vmax.f32 %v120_v25, %v121_v26 }
  0x8a   :  { %v1486_v10 = vld [vmem:[%s112_s11] sm:$0x1]  ;;  %s1684_s15 = sld [smem:[#allocation25_spill]]  ;;  %s1685_s22 = sld [smem:[#allocation26_spill]] }
  0x8b   :  { %v116_v11 = vld [vmem:[%s115_s3] sm:$0x1]  ;;  %s190_s21 = scalar_lea.vmem [#allocation7], %s1679_s2  ;;  %s1686_s16 = sld [smem:[#allocation27_spill]]  ;;  %v122_v27 = vmax.f32 %v1483_v9, %v1486_v10  ;;  %v1554_v39 = vmax.f32 %v184_v17, %v185_v18 }
  0x8c   :  { %v119_v12 = vld [vmem:[%s118_s13] sm:$0x1]  ;;  %s193_s23 = scalar_lea.vmem [#allocation7], %s1680_s6  ;;  %s1687_s7 = sld [smem:[#allocation28_spill]] }
  0x8d   :  { %v1501_v19 = vld [vmem:[%s190_s21] sm:$0x1]  ;;  %s196_s8 = scalar_lea.vmem [#allocation7], %s1681_s17  ;;  %s1688_s14 = sld [smem:[#allocation29_spill]]  ;;  %v123_v28 = vmax.f32 %v116_v11, %v119_v12  ;;  %v188_v60 = vmax.f32 %v1552_v38, %v1554_v39 }
  0x8e   :  { %v1504_v20 = vld [vmem:[%s193_s23] sm:$0x1]  ;;  %s199_s9 = scalar_lea.vmem [#allocation7], %s1682_s18  ;;  %s1689_s28 = sld [smem:[#allocation30_spill]] }
  0x8f   :  { %v1507_v21 = vld [vmem:[%s196_s8] sm:$0x1]  ;;  %s202_s30 = scalar_lea.vmem [#allocation7], %s1683_s20  ;;  %s1690_s11 = sld [smem:[#allocation31_spill]]  ;;  %v213_v41 = vmax.f32 %v1501_v19, %v1504_v20  ;;  %v1575_v47 = vmax.f32 %v122_v27, %v123_v28  ;;  %v348_v18 = vrot.slane %v188_v60, 6 }
  0x90   :  { %v1510_v22 = vld [vmem:[%s199_s9] sm:$0x1]  ;;  %s205_s2 = scalar_lea.vmem [#allocation7], %s1684_s15  ;;  %s208_s6 = scalar_lea.vmem [#allocation7], %s1685_s22 }
  0x91   :  { %v1513_v23 = vld [vmem:[%s202_s30] sm:$0x1]  ;;  %s211_s17 = scalar_lea.vmem [#allocation7], %s1686_s16  ;;  %s233_s15 = scalar_lea.vmem [#allocation7], %s1421_s4  ;;  %v214_v42 = vmax.f32 %v1507_v21, %v1510_v22  ;;  %v126_v0 = vmax.f32 %v1573_v46, %v1575_v47 }
  0x92   :  { %v1516_v24 = vld [vmem:[%s205_s2] sm:$0x1]  ;;  %s221_s3 = scalar_lea.vmem [#allocation7], %s1687_s7  ;;  %s236_s21 = scalar_lea.vmem [#allocation7], %s1425_s24 }
  0x93   :  { %v1525_v29 = vld [vmem:[%s208_s6] sm:$0x1]  ;;  %s224_s18 = scalar_lea.vmem [#allocation7], %s1688_s14  ;;  %s1546_s22 = sld [smem:[#allocation3 + $0x300]]  ;;  %v215_v43 = vmax.f32 %v1513_v23, %v1516_v24  ;;  %v217_v61 = vmax.f32 %v213_v41, %v214_v42  ;;  %v366_v25 = vsel %vm365_vm1, %v126_v0, %v345_v63  ;;  %v570_v0 = vld [vmem:[#allocation11 + $0x18] sm:$0xff] }
  0x94   :  { %v212_v30 = vld [vmem:[%s211_s17] sm:$0x1]  ;;  %s227_s13 = scalar_lea.vmem [#allocation7], %s1689_s28  ;;  %s1548_s23 = sld [smem:[#allocation3 + $0x301]] }
  0x95   :  { %v1529_v31 = vld [vmem:[%s221_s3] sm:$0x1]  ;;  %s230_s20 = scalar_lea.vmem [#allocation7], %s1690_s11  ;;  %s239_s16 = scalar_lea.vmem [#allocation7], %s1427_s25  ;;  %v216_v44 = vmax.f32 %v1525_v29, %v212_v30 }
  0x96   :  { %v1532_v32 = vld [vmem:[%s224_s18] sm:$0x1]  ;;  %s1557_s4 = sld [smem:[#allocation3 + $0x302]]  ;;  %s1559_s24 = sld [smem:[#allocation3 + $0x303]] }
  0x97   :  { %v1535_v33 = vld [vmem:[%s227_s13] sm:$0x1]  ;;  %s242_s25 = scalar_lea.vmem [#allocation7], %s1430_s26  ;;  %s1569_s8 = sld [smem:[#allocation3 + $0x304]]  ;;  %v244_v55 = vmax.f32 %v1529_v31, %v1532_v32  ;;  %v218_v62 = vmax.f32 %v215_v43, %v216_v44 }
  0x98   :  { %v1538_v34 = vld [vmem:[%s230_s20] sm:$0x1]  ;;  %s1571_s7 = sld [smem:[#allocation3 + $0x305]]  ;;  %s252_s9 = scalar_lea.vmem [#allocation7], %s1432_s27 }
  0x99   :  { %v1541_v35 = vld [vmem:[%s233_s15] sm:$0x1]  ;;  %s255_s14 = scalar_lea.vmem [#allocation7], %s1435_s29  ;;  %s258_s30 = scalar_lea.vmem [#allocation7], %s1437_s5  ;;  %v245_v56 = vmax.f32 %v1535_v33, %v1538_v34  ;;  %v219_v15 = vmax.f32 %v217_v61, %v218_v62  ;;  %v368_v34 = vsel %vm367_vm2, %v366_v25, %v348_v18  ;;  %v568_v61 = vld [vmem:[#allocation11 + $0x8] sm:$0xff]  ;;  %v569_v62 = vld [vmem:[#allocation11 + $0x10] sm:$0xff] }
  0x9a   :  { %v1544_v36 = vld [vmem:[%s236_s21] sm:$0x1]  ;;  %s261_s28 = scalar_lea.vmem [#allocation7], %s1445_s10  ;;  %s264_s26 = scalar_lea.vmem [#allocation7], %s1447_s1 }
  0x9b   :  { %v240_v40 = vld [vmem:[%s239_s16] sm:$0x1]  ;;  %s267_s2 = scalar_lea.vmem [#allocation7], %s1459_s0  ;;  %s1583_s11 = sld [smem:[#allocation3 + $0x306]]  ;;  %v246_v57 = vmax.f32 %v1541_v35, %v1544_v36  ;;  %v248_v11 = vmax.f32 %v244_v55, %v245_v56  ;;  %v351_v28 = vrot.slane %v219_v15, 5 }
  0x9c   :  { %v243_v45 = vld [vmem:[%s242_s25] sm:$0x1]  ;;  %s1585_s6 = sld [smem:[#allocation3 + $0x307]]  ;;  %s270_s17 = scalar_lea.vmem [#allocation7], %s1461_s19 }
  0x9d   :  { %v253_v48 = vld [vmem:[%s252_s9] sm:$0x1]  ;;  %s1588_s27 = sld [smem:[#allocation3 + $0x380]]  ;;  %s1590_s29 = sld [smem:[#allocation3 + $0x381]]  ;;  %v247_v58 = vmax.f32 %v240_v40, %v243_v45  ;;  %v370_v39 = vsel %vm369_vm3, %v368_v34, %v351_v28 }
  0x9e   :  { %v256_v49 = vld [vmem:[%s255_s14] sm:$0x1]  ;;  %s273_s5 = scalar_lea.vmem [#allocation7], %s1466_s12  ;;  %s1599_s10 = sld [smem:[#allocation3 + $0x382]] }
  0x9f   :  { %v259_v50 = vld [vmem:[%s258_s30] sm:$0x1]  ;;  %s1601_s1 = sld [smem:[#allocation3 + $0x383]]  ;;  %s283_s0 = scalar_lea.vmem [#allocation7], %s1546_s22  ;;  %v275_v4 = vmax.f32 %v253_v48, %v256_v49  ;;  %v249_v12 = vmax.f32 %v246_v57, %v247_v58  ;;  %v487_v57 = vld [vmem:[#allocation10 + $0x70] sm:$0xff]  ;;  %v488_v58 = vld [vmem:[#allocation10 + $0x78] sm:$0xff] }
  0xa0   :  { %v262_v51 = vld [vmem:[%s261_s28] sm:$0x1]  ;;  %s286_s19 = scalar_lea.vmem [#allocation7], %s1548_s23  ;;  %s289_s12 = scalar_lea.vmem [#allocation7], %s1557_s4 }
  0xa1   :  { %v265_v52 = vld [vmem:[%s264_s26] sm:$0x1]  ;;  %v276_v5 = vmax.f32 %v259_v50, %v262_v51  ;;  %s292_s3 = scalar_lea.vmem [#allocation7], %s1559_s24  ;;  %s295_s18 = scalar_lea.vmem [#allocation7], %s1569_s8  ;;  %v250_v26 = vmax.f32 %v248_v11, %v249_v12  ;;  %v577_v12 = vld [vmem:[#allocation11 + $0x50] sm:$0xff] }
  0xa2   :  { %v268_v53 = vld [vmem:[%s267_s2] sm:$0x1]  ;;  %s298_s13 = scalar_lea.vmem [#allocation7], %s1571_s7  ;;  %s301_s20 = scalar_lea.vmem [#allocation7], %s1583_s11 }
  0xa3   :  { %v271_v54 = vld [vmem:[%s270_s17] sm:$0x1]  ;;  %v277_v7 = vmax.f32 %v265_v52, %v268_v53  ;;  %s304_s15 = scalar_lea.vmem [#allocation7], %s1585_s6  ;;  %v279_v23 = vmax.f32 %v275_v4, %v276_v5  ;;  %s814_s21 = sld [smem:[#allocation3 + $0x384]]  ;;  %v354_v36 = vrot.slane %v250_v26, 4  ;;  %v572_v4 = vld [vmem:[#allocation11 + $0x28] sm:$0xff] }
  0xa4   :  { %v274_v59 = vld [vmem:[%s273_s5] sm:$0x1]  ;;  %s815_s22 = sld [smem:[#allocation3 + $0x385]]  ;;  %s816_s23 = sld [smem:[#allocation3 + $0x386]] }
  0xa5   :  { %v284_v1 = vld [vmem:[%s283_s0] sm:$0x1]  ;;  %v278_v8 = vmax.f32 %v271_v54, %v274_v59  ;;  %s314_s16 = scalar_lea.vmem [#allocation7], %s1588_s27  ;;  %s817_s4 = sld [smem:[#allocation3 + $0x387]]  ;;  %v372_v47 = vsel %vm371_vm4, %v370_v39, %v354_v36  ;;  %v1023_v59 = vpack.c.bf16 %v488_v58, %v487_v57 }
  0xa6   :  { %v287_v2 = vld [vmem:[%s286_s19] sm:$0x1]  ;;  %s317_s24 = scalar_lea.vmem [#allocation7], %s1590_s29  ;;  %s320_s25 = scalar_lea.vmem [#allocation7], %s1599_s10 }
  0xa7   :  { %v290_v9 = vld [vmem:[%s289_s12] sm:$0x1]  ;;  %v306_v19 = vmax.f32 %v284_v1, %v287_v2  ;;  %v280_v24 = vmax.f32 %v277_v7, %v278_v8  ;;  %s323_s8 = scalar_lea.vmem [#allocation7], %s1601_s1  ;;  %1024 = vmatpush3.bf16.msra.mxu1 %v1023_v59  ;;  %v1029_v1 = vpack.c.bf16 %v570_v0, %v569_v62  ;;  %v574_v7 = vld [vmem:[#allocation11 + $0x38] sm:$0xff]  ;;  %s1691_s2 = sld [smem:[#allocation32_spill]] }
  0xa8   :  { %v293_v10 = vld [vmem:[%s292_s3] sm:$0x1]  ;;  %s1692_s17 = sld [smem:[#allocation33_spill]]  ;;  %s1693_s5 = sld [smem:[#allocation34_spill]] }
  0xa9   :  { %v296_v13 = vld [vmem:[%s295_s18] sm:$0x1]  ;;  %v307_v20 = vmax.f32 %v290_v9, %v293_v10  ;;  %v281_v35 = vmax.f32 %v279_v23, %v280_v24  ;;  %s326_s7 = scalar_lea.vmem [#allocation7], %s814_s21  ;;  %v576_v10 = vld [vmem:[#allocation11 + $0x48] sm:$0xff]  ;;  %v581_v23 = vld [vmem:[#allocation11 + $0x70] sm:$0xff]  ;;  %s1204_s10 = smov [#allocation13]  }
  0xaa   :  { %v299_v14 = vld [vmem:[%s298_s13] sm:$0x1]  ;;  %s329_s9 = scalar_lea.vmem [#allocation7], %s815_s22  ;;  %s332_s14 = scalar_lea.vmem [#allocation7], %s816_s23  ;;  %v582_v24 = vld [vmem:[#allocation11 + $0x78] sm:$0xff] }
  0xab   :  { %v302_v16 = vld [vmem:[%s301_s20] sm:$0x1]  ;;  %v308_v21 = vmax.f32 %v296_v13, %v299_v14  ;;  %v310_v29 = vmax.f32 %v306_v19, %v307_v20  ;;  %v357_v44 = vrot.slane %v281_v35, 3  ;;  %s335_s30 = scalar_lea.vmem [#allocation7], %s817_s4  ;;  %v578_v13 = vld [vmem:[#allocation11 + $0x58] sm:$0xff]  ;;  %v1047_v25 = vpack.c.bf16 %v582_v24, %v581_v23  ;;  %s679_s1 = sshll.u32 %s1204_s10, 4  ;;  %s680_s1 = int_to_ptr.vmem [resolvable:$true] %s679_s1 }
  0xac   :  { %v305_v17 = vld [vmem:[%s304_s15] sm:$0x1]  ;;  %v1041_v14 = vpack.c.bf16 %v578_v13, %v577_v12  ;;  %s1162_s0 = scalar_lea.vmem %s680_s1, 128  ;;  %p1167_p8 = scmp.lt.s32.totalorder %s680_s1, %s680_s1 }
  0xad   :  { %v309_v22 = vmax.f32 %v302_v16, %v305_v17  ;;  %v315_v27 = vld [vmem:[%s314_s16] sm:$0x1]  ;;  %v374_v52 = vsel %vm373_vm5, %v372_v47, %v357_v44  ;;  %v580_v16 = vld [vmem:[#allocation11 + $0x68] sm:$0xff]  ;;  %p1163_p7 = scmp.ne.s32.totalorder %s680_s1, %s1162_s0  ;;  %p1168_p9 = scmp.lt.s32.totalorder %s1162_s0, %s1162_s0 }
  0xae   :  { %v318_v31 = vld [vmem:[%s317_s24] sm:$0x1] }
  0xaf   :  { %v311_v30 = vmax.f32 %v308_v21, %v309_v22  ;;  %v321_v32 = vld [vmem:[%s320_s25] sm:$0x1]  ;;  %v337_v37 = vmax.f32 %v315_v27, %v318_v31  ;;  %p1169_p10 = por %p1168_p9, %p1167_p8 }
  0xb0   :  { %v324_v33 = vld [vmem:[%s323_s8] sm:$0x1] }
  0xb1   :  { %v338_v38 = vmax.f32 %v321_v32, %v324_v33  ;;  %v312_v40 = vmax.f32 %v310_v29, %v311_v30  ;;  %v327_v41 = vld [vmem:[%s326_s7] sm:$0x1]  ;;  %p1170_p11 = pnand %p1169_p10, %p1163_p7 }
  0xb2   :  { %v330_v42 = vld [vmem:[%s329_s9] sm:$0x1] }
  0xb3   :  { %v333_v43 = vld [vmem:[%s332_s14] sm:$0x1]  ;;  %v339_v46 = vmax.f32 %v327_v41, %v330_v42  ;;  %v341_v49 = vmax.f32 %v337_v37, %v338_v38  ;;  %v360_v50 = vrot.slane %v312_v40, 2 }
  0xb4   :  { %v336_v45 = vld [vmem:[%s335_s30] sm:$0x1] }
  0xb5   :  { %v340_v48 = vmax.f32 %v333_v43, %v336_v45  ;;  %v376_v54 = vsel %vm375_vm6, %v374_v52, %v360_v50  ;;  %v567_v60 = vld [vmem:[#allocation11] sm:$0xff] }
  0xb6   :  { %v1026_v63 = vpack.c.bf16 %v568_v61, %v567_v60  ;;  %v571_v2 = vld [vmem:[#allocation11 + $0x20] sm:$0xff] }
  0xb7   :  { %v342_v51 = vmax.f32 %v339_v46, %v340_v48  ;;  %v1032_v5 = vpack.c.bf16 %v572_v4, %v571_v2  ;;  %v575_v9 = vld [vmem:[#allocation11 + $0x40] sm:$0xff] }
  0xb8   :  { %v1038_v11 = vpack.c.bf16 %v576_v10, %v575_v9  ;;  %v579_v15 = vld [vmem:[#allocation11 + $0x60] sm:$0xff] }
  0xb9   :  { %v343_v53 = vmax.f32 %v341_v49, %v342_v51  ;;  %v1044_v17 = vpack.c.bf16 %v580_v16, %v579_v15  ;;  %v818_v18 = vld [vmem:[%s1691_s2] ss:$0 sm:$0xff] }
  0xba   :  { %v819_v26 = vld [vmem:[%s1692_s17] ss:$0 sm:$0xff] }
  0xbb   :  { %v363_v55 = vrot.slane %v343_v53, 1  ;;  %v820_v30 = vld [vmem:[%s1693_s5] ss:$0 sm:$0xff] }
  0xbd   :  { %v378_v56 = vsel %vm377_vm7, %v376_v54, %v363_v55 }
  0xbe   :  { %905 = vmatmul.mubr.f32.vlgmr.msra.gmra.mrb[0].mxu0 %v378_v56 }
  0xbf   :  { %974 = vmatprep.mubr.msk.f32.mxu0 %vm1202_vm0, %v1203_v6  ;;  %1027 = vmatpush3.bf16.msra.mxu0 %v1026_v63  ;;  %v573_v6 = vld [vmem:[#allocation11 + $0x30] sm:$0xff] }
  0xc0   :  { %1028 = vmatprep.subr.bf16.mxu0 %v1201_v3  ;;  %v1035_v8 = vpack.c.bf16 %v574_v7, %v573_v6 }
  0xc3   :  { %1030 = vmatpush3.bf16.msra.mxu0 %v1029_v1 }
  0xc4   :  { %1031 = vmatprep.subr.bf16.mxu0 %v1201_v3 }
  0xc7   :  { %1033 = vmatpush3.bf16.msra.mxu0 %v1032_v5 }
  0xc8   :  { %1034 = vmatprep.subr.bf16.mxu0 %v1201_v3 }
  0xcb   :  { %1036 = vmatpush3.bf16.msra.mxu0 %v1035_v8 }
  0xcc   :  { %1037 = vmatprep.subr.bf16.mxu0 %v1201_v3 }
  0xcf   :  { %1039 = vmatpush3.bf16.msra.mxu0 %v1038_v11 }
  0xd0   :  { %1040 = vmatprep.subr.bf16.mxu0 %v1201_v3 }
  0xd3   :  { %1042 = vmatpush3.bf16.msra.mxu0 %v1041_v14 }
  0xd4   :  { %1043 = vmatprep.subr.bf16.mxu0 %v1201_v3 }
  0xd7   :  { %1045 = vmatpush3.bf16.msra.mxu0 %v1044_v17 }
  0xd8   :  { %1046 = vmatprep.subr.bf16.mxu0 %v1201_v3 }
  0xdb   :  { %1048 = vmatpush3.bf16.msra.mxu0 %v1047_v25 }
 0x191   :  { %v468_v19 = vpop.f32.mrb[0].mxu0 }
 0x192   :  { %v469_v20 = vadd.f32 %v818_v18, %v468_v19  ;;  %v906_v21 = vpop.f32.mrb[1].mxu0 }
 0x194   :  { %v472_v22 = vmax.f32 %v469_v20, 0.0 }
 0x196   :  { %940 = vmatmul.mubr.f32.vlgmr.msra.gmra.mrb[0].mxu1 %v472_v22 }
 0x269   :  { %v562_v27 = vpop.f32.mrb[0].mxu1 }
 0x26a   :  { %v563_v28 = vadd.f32 %v819_v26, %v562_v27  ;;  %v941_v3 = vpop.f32.mrb[1].mxu1 }
 0x26c   :  { %v566_v29 = vmax.f32 %v563_v28, 0.0 }
 0x26e   :  { %975 = vmatmul.mubr.f32.vlgmr.msra.gmra.mrb[2].mxu0 %v566_v29 }
 0x341   :  { %v656_v31 = vpop.f32.mrb[2].mxu0 }
 0x342   :  { %v657_v32 = vadd.f32 %v820_v30, %v656_v31  ;;  %v976_v33 = vpop.f32.mrb[3].mxu0 }
 0x344   :  { %660 = vmax.xlane.f32.xlu0 %v657_v32 }
 0x3d1   :  { %v661_v34 = vpop.xlane.xlu0 %660 }
 0x3d2   :  { %v662_v35 = vsub.f32 %v657_v32, %v661_v34 }
 0x3d4   :  { %v663_v36 = vmul.f32 1.442695, %v662_v35 }
 0x3d6   :  { %1060 = vpow2.f32 %v663_v36 }
 0x3e0   :  { %v1061_v37 = vpop.eup %1060 }
 0x3e1   :  { %665 = vadd.xlane.f32.xlu0 %v1061_v37 }
 0x46e   :  { %v666_v38 = vpop.xlane.xlu0 %665 }
 0x46f   :  { %1062 = vrcp.f32 %v666_v38 }
 0x479   :  { %v1063_v39 = vpop.eup %1062 }
 0x47a   :  { %v668_v40 = vmul.f32 %v1063_v39, %v666_v38 }
 0x47c   :  { %v669_v41 = vsub.f32 2.0, %v668_v40 }
 0x47e   :  { %v670_v42 = vmul.f32 %v1063_v39, %v669_v41 }
 0x480   :  { %v671_v43 = vmul.f32 %v1061_v37, %v670_v42 }
 0x482   :  { %672 = vst [vmem:[#allocation13] sm:$0xff] %v671_v43 }
 0x483   :  { %1173 = shalt.err (!%p1170_p11)
}
 0x484   :  { %s1694_s3 = sld [smem:[#allocation35_spill]] }
 0x48a   :  { %s1174_s18 = scalar_lea.hbm %s1694_s3, 128 }
 0x48b   :  { %p1175_p12 = scmp.ne.s32.totalorder %s1694_s3, %s1174_s18  ;;  %p1178_p13 = scmp.lt.u32.totalorder %s1174_s18, %s1694_s3 }
 0x48d   :  { %p1180_p0 = pnand %p1178_p13, %p1175_p12 }
 0x48f   :  { %1183 = shalt.err (!%p1180_p0)
}
 0x490   :  { %682 = dma.vmem_to_hbm [thread:$0]  %s680_s1, 128, %s1694_s3, [#allocation5]  }
 0x491   :  { %1192 = dma.done.wait [#allocation5], 128  }
 0x492   :  { %1193 = vsyncadd [#allocation5], 4294967168 }
 0x493   :  { %686 = vsyncpa [#allocation4], 1 }
 0x494   :  { %687 = vsyncpa [#allocation9], 1 }
 0x495   :  { %688 = vsyncpa [#allocation12], 1 }
 0x496   :  { %689 = vsyncpa [#allocation5], 1 }
 0x497   :  { %690 = vsyncpa [#allocation6], 1 }

</bundles_post_ra>
